<compile_context>
chip_gen: v7x
topology: tpu7x:2x2x1
jax: 0.10.0
libtpu: 0.0.40
codegen_flags: <defaults>
</compile_context>

<pallas_src>
import functools

import jax
import jax.numpy as jnp
from jax.experimental import pallas as pl
from jax.experimental.pallas import tpu as pltpu

LN_EPS = 1e-5


def _round_up(v, m):
    return ((v + m - 1) // m) * m


def _pad2(a, rows, cols):
    return jnp.zeros((rows, cols), a.dtype).at[: a.shape[0], : a.shape[1]].set(a)


def _masked_layer_norm(o, gamma, beta, d):
    """LayerNorm over the first `d` lanes (last dim is zero-padded to 128k).

    Two-pass variance (mean of squared deviations).  Padded lanes come out as
    exactly 0 because gamma/beta are zero-padded.
    """
    dpad = o.shape[-1]
    lane = jax.lax.broadcasted_iota(jnp.int32, (1, dpad), 1)
    valid = (lane < d).astype(jnp.float32)
    inv_d = jnp.float32(1.0 / d)
    mu = jnp.sum(o * valid, axis=-1, keepdims=True) * inv_d
    diff = (o - mu) * valid
    var = jnp.sum(diff * diff, axis=-1, keepdims=True) * inv_d
    return diff * jax.lax.rsqrt(var + LN_EPS) * gamma + beta


# -----------------------------------------------------------------------------
# Edge processor: e_new = edge_attr + LN(MLP(concat([h_i, h_j, edge_attr])))
# -----------------------------------------------------------------------------
def edge_kernel(hi_ref, hj_ref, e_ref,
                w1a_ref, w1b_ref, w1c_ref, b1_ref, w2_ref, b2_ref, g_ref,
                beta_ref, out_ref, *, d_model):
    # concat([h_i, h_j, e]) @ W1  ==  h_i @ W1a + h_j @ W1b + e @ W1c
    h = jnp.dot(hi_ref[...], w1a_ref[...], preferred_element_type=jnp.float32)
    h = h + jnp.dot(hj_ref[...], w1b_ref[...], preferred_element_type=jnp.float32)
    h = h + jnp.dot(e_ref[...].astype(jnp.bfloat16), w1c_ref[...],
                    preferred_element_type=jnp.float32)
    h = jnp.maximum(h + b1_ref[...], 0.0)
    o = jnp.dot(h.astype(jnp.bfloat16), w2_ref[...],
                preferred_element_type=jnp.float32) + b2_ref[...]
    o = _masked_layer_norm(o, g_ref[...], beta_ref[...], d_model)
    out_ref[...] = e_ref[...] + o        # residual reuses the f32 edge_attr stream


# -----------------------------------------------------------------------------
# Node processor: x_new = x + LN(MLP(concat([x, scatter_add(e_new, j)])))
# -----------------------------------------------------------------------------
def node_kernel(bs_ref, bc_ref,                    # scalar-prefetch (SMEM)
                x_ref, e_ref, j_ref,
                w1a_ref, w1b_ref, b1_ref, w2_ref, b2_ref, g_ref, beta_ref,
                out_ref, acc_ref, *, d_model):
    n_i = pl.program_id(0)
    e_i = pl.program_id(1)
    tn = acc_ref.shape[0]
    te = e_ref.shape[0]

    @pl.when(e_i == 0)
    def _():
        acc_ref[...] = jnp.zeros_like(acc_ref)

    # Edges are sorted by destination, so this node tile only sees bc_ref[n_i]
    # consecutive edge blocks (the index_map clamps the block index for the
    # remaining steps -> no re-DMA; compute is skipped here).
    @pl.when(e_i < bc_ref[n_i])
    def _():
        local = j_ref[...] - n_i * tn                          # (1, TILE_E) int32
        rows = jax.lax.broadcasted_iota(jnp.int32, (tn, te), 0)
        one_hot = (rows == local).astype(jnp.bfloat16)         # 0/1 exact in bf16
        acc_ref[...] += jnp.dot(one_hot, e_ref[...].astype(jnp.bfloat16),
                                preferred_element_type=jnp.float32)

    @pl.when(e_i == pl.num_programs(1) - 1)
    def _():
        agg = acc_ref[...]
        # concat([x, agg]) @ W1 == x @ W1a + agg @ W1b
        h = jnp.dot(x_ref[...].astype(jnp.bfloat16), w1a_ref[...],
                    preferred_element_type=jnp.float32)
        h = h + jnp.dot(agg.astype(jnp.bfloat16), w1b_ref[...],
                        preferred_element_type=jnp.float32)
        h = jnp.maximum(h + b1_ref[...], 0.0)
        o = jnp.dot(h.astype(jnp.bfloat16), w2_ref[...],
                    preferred_element_type=jnp.float32) + b2_ref[...]
        o = _masked_layer_norm(o, g_ref[...], beta_ref[...], d_model)
        out_ref[...] = x_ref[...] + o


# -----------------------------------------------------------------------------
# Wrapper
# -----------------------------------------------------------------------------
def graph_nets_conv(params, x, edge_index, edge_attr, tile_e=2048, tile_n=1024):
    N, D = x.shape
    E, ED = edge_attr.shape
    assert ED == D, "residual in EdgeProcessor requires edge_dim == node_dim"
    H = 2 * D

    # lane-dense feature dims (multiples of 128) so vregs / MXU N-dim / stores are full
    D_pad = _round_up(D, 128)
    H_pad = _round_up(H, 128)

    # row tiles: TILE_E a multiple of 128 whenever the edge axis has >1 block so
    # the (1, TILE_E) j-row block is legal; TILE_N a multiple of 8 (sublane).
    TILE_E = min(_round_up(tile_e, 128), _round_up(E, 8))
    TILE_N = min(_round_up(tile_n, 8), _round_up(N, 8))
    E_pad = _round_up(E, TILE_E)
    N_pad = _round_up(N, TILE_N)
    EB = E_pad // TILE_E
    NB = N_pad // TILE_N

    i_idx = edge_index[0].astype(jnp.int32)
    j_idx = edge_index[1].astype(jnp.int32)

    # ---- sort edges by destination (CSR-style).  Padded edges get a sentinel
    # destination >= N_pad so they sort last and never match any node id.
    sentinel = jnp.int32(N_pad)
    j_full = jnp.concatenate([j_idx, jnp.full((E_pad - E,), sentinel, jnp.int32)])
    i_full = jnp.concatenate([i_idx, jnp.zeros((E_pad - E,), jnp.int32)])
    order = jnp.argsort(j_full)                       # stable; real edges first
    j_sorted = j_full[order]
    i_sorted = i_full[order]

    ea_sorted = (jnp.zeros((E_pad, D_pad), jnp.float32)
                 .at[:E, :D].set(edge_attr))[order]

    x_pad = jnp.zeros((N_pad, D_pad), jnp.float32).at[:N, :D].set(x)
    x_b = x_pad.astype(jnp.bfloat16)
    hi_rows = jnp.take(x_b, jnp.minimum(i_sorted, N_pad - 1), axis=0)   # bf16
    hj_rows = jnp.take(x_b, jnp.minimum(j_sorted, N_pad - 1), axis=0)   # bf16
    # TODO(synk): move this gather in-kernel (scalar-prefetched indices) to drop
    # the h_i / h_j HBM materialization.

    # ---- padded / split / bf16 weights ---------------------------------------
    e_w1, n_w1 = params["e_w1"], params["n_w1"]
    e_w1a = _pad2(e_w1[:D], D_pad, H_pad).astype(jnp.bfloat16)
    e_w1b = _pad2(e_w1[D:2 * D], D_pad, H_pad).astype(jnp.bfloat16)
    e_w1c = _pad2(e_w1[2 * D:], D_pad, H_pad).astype(jnp.bfloat16)
    e_b1 = _pad2(params["e_b1"], 1, H_pad)
    e_w2 = _pad2(params["e_w2"], H_pad, D_pad).astype(jnp.bfloat16)
    e_b2 = _pad2(params["e_b2"], 1, D_pad)
    e_g = _pad2(params["e_g"], 1, D_pad)
    e_beta = _pad2(params["e_beta"], 1, D_pad)

    n_w1a = _pad2(n_w1[:D], D_pad, H_pad).astype(jnp.bfloat16)
    n_w1b = _pad2(n_w1[D:], D_pad, H_pad).astype(jnp.bfloat16)
    n_b1 = _pad2(params["n_b1"], 1, H_pad)
    n_w2 = _pad2(params["n_w2"], H_pad, D_pad).astype(jnp.bfloat16)
    n_b2 = _pad2(params["n_b2"], 1, D_pad)
    n_g = _pad2(params["n_g"], 1, D_pad)
    n_beta = _pad2(params["n_beta"], 1, D_pad)

    # ---- edge stage -----------------------------------------------------------
    row_spec = pl.BlockSpec((TILE_E, D_pad), lambda e: (e, 0))
    const = lambda r, c: pl.BlockSpec((r, c), lambda e: (0, 0))
    e_new_sorted = pl.pallas_call(
        functools.partial(edge_kernel, d_model=D),
        out_shape=jax.ShapeDtypeStruct((E_pad, D_pad), jnp.float32),
        grid_spec=pltpu.PrefetchScalarGridSpec(
            num_scalar_prefetch=0,
            grid=(EB,),
            in_specs=[row_spec, row_spec, row_spec,
                      const(D_pad, H_pad), const(D_pad, H_pad), const(D_pad, H_pad),
                      const(1, H_pad),
                      const(H_pad, D_pad), const(1, D_pad), const(1, D_pad),
                      const(1, D_pad)],
            out_specs=row_spec),
        compiler_params=pltpu.CompilerParams(
            dimension_semantics=("parallel",),          # >=2 steps -> v7x 2 TCs
            vmem_limit_bytes=32 * 1024 * 1024),
    )(hi_rows, hj_rows, ea_sorted,
      e_w1a, e_w1b, e_w1c, e_b1, e_w2, e_b2, e_g, e_beta)

    # ---- node stage: per-node-tile edge-block ranges (scalar prefetch) --------
    tile_lo = jnp.arange(NB, dtype=jnp.int32) * TILE_N
    e_lo = jnp.searchsorted(j_sorted, tile_lo, side="left").astype(jnp.int32)
    e_hi = jnp.searchsorted(j_sorted, tile_lo + TILE_N, side="left").astype(jnp.int32)
    blk_lo = e_lo // TILE_E
    blk_hi = (e_hi + TILE_E - 1) // TILE_E
    blk_count = jnp.where(e_hi > e_lo, blk_hi - blk_lo, 0).astype(jnp.int32)
    blk_start = jnp.minimum(blk_lo, EB - 1).astype(jnp.int32)

    j_row = j_sorted.reshape(1, E_pad)

    def _eblk(n, e, bs, bc):
        # Clamp so steps past this tile's range keep the same (resident) block.
        return bs[n] + jnp.minimum(e, jnp.maximum(bc[n] - 1, 0))

    x_spec = pl.BlockSpec((TILE_N, D_pad), lambda n, e, bs, bc: (n, 0))
    e_spec = pl.BlockSpec((TILE_E, D_pad),
                          lambda n, e, bs, bc: (_eblk(n, e, bs, bc), 0))
    j_spec = pl.BlockSpec((1, TILE_E),
                          lambda n, e, bs, bc: (0, _eblk(n, e, bs, bc)))
    nconst = lambda r, c: pl.BlockSpec((r, c), lambda n, e, bs, bc: (0, 0))

    x_new_pad = pl.pallas_call(
        functools.partial(node_kernel, d_model=D),
        out_shape=jax.ShapeDtypeStruct((N_pad, D_pad), jnp.float32),
        grid_spec=pltpu.PrefetchScalarGridSpec(
            num_scalar_prefetch=2,
            grid=(NB, EB),
            in_specs=[x_spec, e_spec, j_spec,
                      nconst(D_pad, H_pad), nconst(D_pad, H_pad), nconst(1, H_pad),
                      nconst(H_pad, D_pad), nconst(1, D_pad), nconst(1, D_pad),
                      nconst(1, D_pad)],
            out_specs=pl.BlockSpec((TILE_N, D_pad), lambda n, e, bs, bc: (n, 0)),
            scratch_shapes=[pltpu.VMEM((TILE_N, D_pad), jnp.float32)]),
        compiler_params=pltpu.CompilerParams(
            dimension_semantics=("parallel", "arbitrary"),
            vmem_limit_bytes=32 * 1024 * 1024),
    )(blk_start, blk_count,
      x_pad, e_new_sorted, j_row,
      n_w1a, n_w1b, n_b1, n_w2, n_b2, n_g, n_beta)

    # ---- un-pad / un-sort ------------------------------------------------------
    x_new = x_new_pad[:N, :D]
    e_new = jnp.zeros((E, D), jnp.float32).at[order[:E]].set(e_new_sorted[:E, :D])
    return x_new, e_new


# -----------------------------------------------------------------------------
# Pure-JAX reference (f32 end-to-end, matches the PyTorch forward semantics)
# -----------------------------------------------------------------------------
def _ln_ref(o, gamma, beta):
    mu = jnp.mean(o, axis=-1, keepdims=True)
    var = jnp.mean((o - mu) ** 2, axis=-1, keepdims=True)
    return (o - mu) * jax.lax.rsqrt(var + LN_EPS) * gamma + beta


def reference(params, x, edge_index, edge_attr):
    i, j = edge_index[0], edge_index[1]
    cat = jnp.concatenate([x[i], x[j], edge_attr], axis=-1)
    h = jnp.maximum(cat @ params["e_w1"] + params["e_b1"], 0.0)
    o = h @ params["e_w2"] + params["e_b2"]
    o = _ln_ref(o, params["e_g"], params["e_beta"])
    e_new = edge_attr + o

    agg = jax.ops.segment_sum(e_new, j, num_segments=x.shape[0])
    cat2 = jnp.concatenate([x, agg], axis=-1)
    h2 = jnp.maximum(cat2 @ params["n_w1"] + params["n_b1"], 0.0)
    o2 = h2 @ params["n_w2"] + params["n_b2"]
    o2 = _ln_ref(o2, params["n_g"], params["n_beta"])
    return x + o2, e_new


def init_params(key, node_dim, edge_dim):
    D, ED = node_dim, edge_dim
    ks = jax.random.split(key, 8)

    def lin_w(k, fan_in, fan_out):
        return jax.random.normal(k, (fan_in, fan_out), jnp.float32) / jnp.sqrt(
            jnp.float32(fan_in))

    def lin_b(k, fan_out):
        return 0.01 * jax.random.normal(k, (1, fan_out), jnp.float32)

    edge_in, edge_hidden = 2 * D + ED, 2 * D
    node_in, node_hidden = D + ED, 2 * D
    return dict(
        e_w1=lin_w(ks[0], edge_in, edge_hidden), e_b1=lin_b(ks[1], edge_hidden),
        e_w2=lin_w(ks[2], edge_hidden, D),       e_b2=lin_b(ks[3], D),
        e_g=jnp.ones((1, D), jnp.float32),       e_beta=jnp.zeros((1, D), jnp.float32),
        n_w1=lin_w(ks[4], node_in, node_hidden), n_b1=lin_b(ks[5], node_hidden),
        n_w2=lin_w(ks[6], node_hidden, D),       n_b2=lin_b(ks[7], D),
        n_g=jnp.ones((1, D), jnp.float32),       n_beta=jnp.zeros((1, D), jnp.float32),
    )


if __name__ == "__main__":
    node_dim = edge_dim = 32   # residual in EdgeProcessor requires edge_dim == node_dim
    N, E = 96, 640

    k1, k2, k3, k4 = jax.random.split(jax.random.PRNGKey(0), 4)
    x = jax.random.normal(k1, (N, node_dim), jnp.float32)
    edge_attr = jax.random.normal(k2, (E, edge_dim), jnp.float32)
    src = jax.random.randint(k3, (E,), 0, N, jnp.int32)
    dst = jax.random.randint(k4, (E,), 0, N, jnp.int32)
    edge_index = jnp.stack([src, dst], axis=0)

    params = init_params(jax.random.PRNGKey(1), node_dim, edge_dim)

    fwd = jax.jit(graph_nets_conv, static_argnames=("tile_e", "tile_n"))
    # Small tiles for the demo so multiple node/edge tiles (and the CSR-style
    # block ranges + padded-edge path) are actually exercised; production sizes
    # should use the large defaults.
    x_out, e_out = fwd(params, x, edge_index, edge_attr, tile_e=256, tile_n=32)
    jax.block_until_ready((x_out, e_out))

    x_ref, e_ref = reference(params, x, edge_index, edge_attr)
    # Tolerance vs the f32 reference: matmuls and the one-hot scatter run in
    # bf16 with f32 accumulation (two MLP+LN stages -> ~1e-2 worst-case error).
    assert jnp.allclose(e_out, e_ref, atol=5e-2, rtol=2e-2), "edge output mismatch"
    assert jnp.allclose(x_out, x_ref, atol=5e-2, rtol=2e-2), "node output mismatch"

    print("KERNEL_OK")
</pallas_src>

<mosaic_0001>
module attributes {stable_mosaic.version = 11 : i64} {
  func.func @edge_kernel(%arg0: i32, %arg1: memref<256x128xbf16, #tpu.memory_space<vmem>>, %arg2: memref<256x128xbf16, #tpu.memory_space<vmem>>, %arg3: memref<256x128xf32, #tpu.memory_space<vmem>>, %arg4: memref<128x128xbf16, #tpu.memory_space<vmem>>, %arg5: memref<128x128xbf16, #tpu.memory_space<vmem>>, %arg6: memref<128x128xbf16, #tpu.memory_space<vmem>>, %arg7: memref<1x128xf32, #tpu.memory_space<vmem>>, %arg8: memref<128x128xbf16, #tpu.memory_space<vmem>>, %arg9: memref<1x128xf32, #tpu.memory_space<vmem>>, %arg10: memref<1x128xf32, #tpu.memory_space<vmem>>, %arg11: memref<1x128xf32, #tpu.memory_space<vmem>>, %arg12: memref<256x128xf32, #tpu.memory_space<vmem>>) attributes {dimension_semantics = [#tpu.dimension_semantics<parallel>], iteration_bounds = array<i64: 3>, scalar_prefetch = 0 : i64, scratch_operands = 0 : i64, tpu.core_type = #tpu.core_type<tc>, window_params = [{transform_indices = @transform_0, window_bounds = array<i64: 256, 128>}, {transform_indices = @transform_1, window_bounds = array<i64: 256, 128>}, {transform_indices = @transform_2, window_bounds = array<i64: 256, 128>}, {pipeline_mode = #tpu.pipeline_mode<synchronous>, transform_indices = @transform_3, window_bounds = array<i64: 128, 128>}, {pipeline_mode = #tpu.pipeline_mode<synchronous>, transform_indices = @transform_4, window_bounds = array<i64: 128, 128>}, {pipeline_mode = #tpu.pipeline_mode<synchronous>, transform_indices = @transform_5, window_bounds = array<i64: 128, 128>}, {pipeline_mode = #tpu.pipeline_mode<synchronous>, transform_indices = @transform_6, window_bounds = array<i64: 1, 128>}, {pipeline_mode = #tpu.pipeline_mode<synchronous>, transform_indices = @transform_7, window_bounds = array<i64: 128, 128>}, {pipeline_mode = #tpu.pipeline_mode<synchronous>, transform_indices = @transform_8, window_bounds = array<i64: 1, 128>}, {pipeline_mode = #tpu.pipeline_mode<synchronous>, transform_indices = @transform_9, window_bounds = array<i64: 1, 128>}, {pipeline_mode = #tpu.pipeline_mode<synchronous>, transform_indices = @transform_10, window_bounds = array<i64: 1, 128>}, {transform_indices = @transform_11, window_bounds = array<i64: 256, 128>}]} {
    %c0 = arith.constant 0 : index
    %c0_0 = arith.constant 0 : index
    %0 = vector.load %arg1[%c0, %c0_0] : memref<256x128xbf16, #tpu.memory_space<vmem>>, vector<256x128xbf16>
    %c0_1 = arith.constant 0 : index
    %c0_2 = arith.constant 0 : index
    %1 = vector.load %arg4[%c0_1, %c0_2] : memref<128x128xbf16, #tpu.memory_space<vmem>>, vector<128x128xbf16>
    %cst = arith.constant dense<0.000000e+00> : vector<256x128xf32>
    %2 = tpu.matmul %0, %1, %cst {dimension_numbers = #tpu.dot_dimension_numbers<[1], [0], [0], [1], [0, 0, 1, 1], [], []>} : vector<256x128xbf16>, vector<128x128xbf16>, vector<256x128xf32> -> vector<256x128xf32>
    %c0_3 = arith.constant 0 : index
    %c0_4 = arith.constant 0 : index
    %3 = vector.load %arg2[%c0_3, %c0_4] : memref<256x128xbf16, #tpu.memory_space<vmem>>, vector<256x128xbf16>
    %c0_5 = arith.constant 0 : index
    %c0_6 = arith.constant 0 : index
    %4 = vector.load %arg5[%c0_5, %c0_6] : memref<128x128xbf16, #tpu.memory_space<vmem>>, vector<128x128xbf16>
    %cst_7 = arith.constant dense<0.000000e+00> : vector<256x128xf32>
    %5 = tpu.matmul %3, %4, %cst_7 {dimension_numbers = #tpu.dot_dimension_numbers<[1], [0], [0], [1], [0, 0, 1, 1], [], []>} : vector<256x128xbf16>, vector<128x128xbf16>, vector<256x128xf32> -> vector<256x128xf32>
    %6 = arith.addf %2, %5 : vector<256x128xf32>
    %c0_8 = arith.constant 0 : index
    %c0_9 = arith.constant 0 : index
    %7 = vector.load %arg3[%c0_8, %c0_9] : memref<256x128xf32, #tpu.memory_space<vmem>>, vector<256x128xf32>
    %8 = arith.truncf %7 : vector<256x128xf32> to vector<256x128xbf16>
    %c0_10 = arith.constant 0 : index
    %c0_11 = arith.constant 0 : index
    %9 = vector.load %arg6[%c0_10, %c0_11] : memref<128x128xbf16, #tpu.memory_space<vmem>>, vector<128x128xbf16>
    %cst_12 = arith.constant dense<0.000000e+00> : vector<256x128xf32>
    %10 = tpu.matmul %8, %9, %cst_12 {dimension_numbers = #tpu.dot_dimension_numbers<[1], [0], [0], [1], [0, 0, 1, 1], [], []>} : vector<256x128xbf16>, vector<128x128xbf16>, vector<256x128xf32> -> vector<256x128xf32>
    %11 = arith.addf %6, %10 : vector<256x128xf32>
    %c0_13 = arith.constant 0 : index
    %c0_14 = arith.constant 0 : index
    %12 = vector.load %arg7[%c0_13, %c0_14] : memref<1x128xf32, #tpu.memory_space<vmem>>, vector<1x128xf32>
    %13 = vector.broadcast %12 : vector<1x128xf32> to vector<256x128xf32>
    %14 = arith.addf %11, %13 : vector<256x128xf32>
    %cst_15 = arith.constant 0.000000e+00 : f32
    %15 = vector.broadcast %cst_15 : f32 to vector<256x128xf32>
    %16 = arith.maximumf %14, %15 : vector<256x128xf32>
    %17 = arith.truncf %16 : vector<256x128xf32> to vector<256x128xbf16>
    %c0_16 = arith.constant 0 : index
    %c0_17 = arith.constant 0 : index
    %18 = vector.load %arg8[%c0_16, %c0_17] : memref<128x128xbf16, #tpu.memory_space<vmem>>, vector<128x128xbf16>
    %cst_18 = arith.constant dense<0.000000e+00> : vector<256x128xf32>
    %19 = tpu.matmul %17, %18, %cst_18 {dimension_numbers = #tpu.dot_dimension_numbers<[1], [0], [0], [1], [0, 0, 1, 1], [], []>} : vector<256x128xbf16>, vector<128x128xbf16>, vector<256x128xf32> -> vector<256x128xf32>
    %c0_19 = arith.constant 0 : index
    %c0_20 = arith.constant 0 : index
    %20 = vector.load %arg9[%c0_19, %c0_20] : memref<1x128xf32, #tpu.memory_space<vmem>>, vector<1x128xf32>
    %21 = vector.broadcast %20 : vector<1x128xf32> to vector<256x128xf32>
    %22 = arith.addf %19, %21 : vector<256x128xf32>
    %c0_21 = arith.constant 0 : index
    %c0_22 = arith.constant 0 : index
    %23 = vector.load %arg10[%c0_21, %c0_22] : memref<1x128xf32, #tpu.memory_space<vmem>>, vector<1x128xf32>
    %c0_23 = arith.constant 0 : index
    %c0_24 = arith.constant 0 : index
    %24 = vector.load %arg11[%c0_23, %c0_24] : memref<1x128xf32, #tpu.memory_space<vmem>>, vector<1x128xf32>
    %25 = tpu.iota {dimensions = array<i32: 1>} : vector<1x128xi32>
    %c32_i32 = arith.constant 32 : i32
    %26 = vector.broadcast %c32_i32 : i32 to vector<1x128xi32>
    %27 = arith.cmpi slt, %25, %26 : vector<1x128xi32>
    %28 = arith.extui %27 : vector<1x128xi1> to vector<1x128xi32>
    %29 = arith.sitofp %28 : vector<1x128xi32> to vector<1x128xf32>
    %30 = vector.broadcast %29 : vector<1x128xf32> to vector<256x128xf32>
    %31 = arith.mulf %22, %30 : vector<256x128xf32>
    %cst_25 = arith.constant dense<0.000000e+00> : vector<256xf32>
    %32 = vector.multi_reduction <add>, %31, %cst_25 [1] : vector<256x128xf32> to vector<256xf32>
    %33 = vector.shape_cast %32 : vector<256xf32> to vector<256x1xf32>
    %cst_26 = arith.constant 3.125000e-02 : f32
    %34 = vector.broadcast %cst_26 : f32 to vector<256x1xf32>
    %35 = arith.mulf %33, %34 : vector<256x1xf32>
    %36 = vector.broadcast %35 : vector<256x1xf32> to vector<256x128xf32>
    %37 = arith.subf %22, %36 : vector<256x128xf32>
    %38 = vector.broadcast %29 : vector<1x128xf32> to vector<256x128xf32>
    %39 = arith.mulf %37, %38 : vector<256x128xf32>
    %40 = arith.mulf %39, %39 : vector<256x128xf32>
    %cst_27 = arith.constant dense<0.000000e+00> : vector<256xf32>
    %41 = vector.multi_reduction <add>, %40, %cst_27 [1] : vector<256x128xf32> to vector<256xf32>
    %42 = vector.shape_cast %41 : vector<256xf32> to vector<256x1xf32>
    %cst_28 = arith.constant 3.125000e-02 : f32
    %43 = vector.broadcast %cst_28 : f32 to vector<256x1xf32>
    %44 = arith.mulf %42, %43 : vector<256x1xf32>
    %cst_29 = arith.constant 9.99999974E-6 : f32
    %45 = vector.broadcast %cst_29 : f32 to vector<256x1xf32>
    %46 = arith.addf %44, %45 : vector<256x1xf32>
    %47 = math.rsqrt %46 : vector<256x1xf32>
    %48 = vector.broadcast %47 : vector<256x1xf32> to vector<256x128xf32>
    %49 = arith.mulf %39, %48 : vector<256x128xf32>
    %50 = vector.broadcast %23 : vector<1x128xf32> to vector<256x128xf32>
    %51 = arith.mulf %49, %50 : vector<256x128xf32>
    %52 = vector.broadcast %24 : vector<1x128xf32> to vector<256x128xf32>
    %53 = arith.addf %51, %52 : vector<256x128xf32>
    %c0_30 = arith.constant 0 : index
    %c0_31 = arith.constant 0 : index
    %54 = vector.load %arg3[%c0_30, %c0_31] : memref<256x128xf32, #tpu.memory_space<vmem>>, vector<256x128xf32>
    %55 = arith.addf %54, %53 : vector<256x128xf32>
    %c0_32 = arith.constant 0 : index
    %c0_33 = arith.constant 0 : index
    %56 = vector.load %arg12[%c0_32, %c0_33] : memref<256x128xf32, #tpu.memory_space<vmem>>, vector<256x128xf32>
    tpu.vector_store %arg12[%c0_32, %c0_33], %55 {strides = array<i32>} : memref<256x128xf32, #tpu.memory_space<vmem>>, vector<256x128xf32>,
    return
  }
  func.func @transform_0(%arg0: i32) -> (i32, i32) {
    %c0_i32 = arith.constant 0 : i32
    %c0_i32_0 = arith.constant 0 : i32
    return %arg0, %c0_i32 : i32, i32
  }
  func.func @transform_1(%arg0: i32) -> (i32, i32) {
    %c0_i32 = arith.constant 0 : i32
    %c0_i32_0 = arith.constant 0 : i32
    return %arg0, %c0_i32 : i32, i32
  }
  func.func @transform_2(%arg0: i32) -> (i32, i32) {
    %c0_i32 = arith.constant 0 : i32
    %c0_i32_0 = arith.constant 0 : i32
    return %arg0, %c0_i32 : i32, i32
  }
  func.func @transform_3(%arg0: i32) -> (i32, i32) {
    %c0_i32 = arith.constant 0 : i32
    %c0_i32_0 = arith.constant 0 : i32
    %c0_i32_1 = arith.constant 0 : i32
    return %c0_i32, %c0_i32_0 : i32, i32
  }
  func.func @transform_4(%arg0: i32) -> (i32, i32) {
    %c0_i32 = arith.constant 0 : i32
    %c0_i32_0 = arith.constant 0 : i32
    %c0_i32_1 = arith.constant 0 : i32
    return %c0_i32, %c0_i32_0 : i32, i32
  }
  func.func @transform_5(%arg0: i32) -> (i32, i32) {
    %c0_i32 = arith.constant 0 : i32
    %c0_i32_0 = arith.constant 0 : i32
    %c0_i32_1 = arith.constant 0 : i32
    return %c0_i32, %c0_i32_0 : i32, i32
  }
  func.func @transform_6(%arg0: i32) -> (i32, i32) {
    %c0_i32 = arith.constant 0 : i32
    %c0_i32_0 = arith.constant 0 : i32
    %c0_i32_1 = arith.constant 0 : i32
    return %c0_i32, %c0_i32_0 : i32, i32
  }
  func.func @transform_7(%arg0: i32) -> (i32, i32) {
    %c0_i32 = arith.constant 0 : i32
    %c0_i32_0 = arith.constant 0 : i32
    %c0_i32_1 = arith.constant 0 : i32
    return %c0_i32, %c0_i32_0 : i32, i32
  }
  func.func @transform_8(%arg0: i32) -> (i32, i32) {
    %c0_i32 = arith.constant 0 : i32
    %c0_i32_0 = arith.constant 0 : i32
    %c0_i32_1 = arith.constant 0 : i32
    return %c0_i32, %c0_i32_0 : i32, i32
  }
  func.func @transform_9(%arg0: i32) -> (i32, i32) {
    %c0_i32 = arith.constant 0 : i32
    %c0_i32_0 = arith.constant 0 : i32
    %c0_i32_1 = arith.constant 0 : i32
    return %c0_i32, %c0_i32_0 : i32, i32
  }
  func.func @transform_10(%arg0: i32) -> (i32, i32) {
    %c0_i32 = arith.constant 0 : i32
    %c0_i32_0 = arith.constant 0 : i32
    %c0_i32_1 = arith.constant 0 : i32
    return %c0_i32, %c0_i32_0 : i32, i32
  }
  func.func @transform_11(%arg0: i32) -> (i32, i32) {
    %c0_i32 = arith.constant 0 : i32
    %c0_i32_0 = arith.constant 0 : i32
    return %arg0, %c0_i32 : i32, i32
  }
}

module attributes {stable_mosaic.version = 11 : i64} {
  func.func @node_kernel(%arg0: i32, %arg1: i32, %arg2: memref<3xi32, #tpu.memory_space<smem>>, %arg3: memref<3xi32, #tpu.memory_space<smem>>, %arg4: memref<32x128xf32, #tpu.memory_space<vmem>>, %arg5: memref<256x128xf32, #tpu.memory_space<vmem>>, %arg6: memref<1x256xi32, #tpu.memory_space<vmem>>, %arg7: memref<128x128xbf16, #tpu.memory_space<vmem>>, %arg8: memref<128x128xbf16, #tpu.memory_space<vmem>>, %arg9: memref<1x128xf32, #tpu.memory_space<vmem>>, %arg10: memref<128x128xbf16, #tpu.memory_space<vmem>>, %arg11: memref<1x128xf32, #tpu.memory_space<vmem>>, %arg12: memref<1x128xf32, #tpu.memory_space<vmem>>, %arg13: memref<1x128xf32, #tpu.memory_space<vmem>>, %arg14: memref<32x128xf32, #tpu.memory_space<vmem>>, %arg15: memref<32x128xf32, #tpu.memory_space<vmem>>) attributes {dimension_semantics = [#tpu.dimension_semantics<parallel>, #tpu.dimension_semantics<arbitrary>], iteration_bounds = array<i64: 3, 3>, scalar_prefetch = 2 : i64, scratch_operands = 1 : i64, tpu.core_type = #tpu.core_type<tc>, window_params = [{transform_indices = @transform_0, window_bounds = array<i64: 32, 128>}, {transform_indices = @transform_1, window_bounds = array<i64: 256, 128>}, {transform_indices = @transform_2, window_bounds = array<i64: 1, 256>}, {pipeline_mode = #tpu.pipeline_mode<synchronous>, transform_indices = @transform_3, window_bounds = array<i64: 128, 128>}, {pipeline_mode = #tpu.pipeline_mode<synchronous>, transform_indices = @transform_4, window_bounds = array<i64: 128, 128>}, {pipeline_mode = #tpu.pipeline_mode<synchronous>, transform_indices = @transform_5, window_bounds = array<i64: 1, 128>}, {pipeline_mode = #tpu.pipeline_mode<synchronous>, transform_indices = @transform_6, window_bounds = array<i64: 128, 128>}, {pipeline_mode = #tpu.pipeline_mode<synchronous>, transform_indices = @transform_7, window_bounds = array<i64: 1, 128>}, {pipeline_mode = #tpu.pipeline_mode<synchronous>, transform_indices = @transform_8, window_bounds = array<i64: 1, 128>}, {pipeline_mode = #tpu.pipeline_mode<synchronous>, transform_indices = @transform_9, window_bounds = array<i64: 1, 128>}, {transform_indices = @transform_10, window_bounds = array<i64: 32, 128>}]} {
    %c0_i32 = arith.constant 0 : i32
    %0 = arith.cmpi eq, %arg1, %c0_i32 : i32
    %1 = arith.extui %0 : i1 to i32
    %c0_i32_0 = arith.constant 0 : i32
    %2 = arith.cmpi ne, %1, %c0_i32_0 : i32
    scf.if %2 {
      %cst = arith.constant 0.000000e+00 : f32
      %11 = vector.broadcast %cst : f32 to vector<32x128xf32>
      %c0 = arith.constant 0 : index
      %c0_3 = arith.constant 0 : index
      %12 = vector.load %arg15[%c0, %c0_3] : memref<32x128xf32, #tpu.memory_space<vmem>>, vector<32x128xf32>
      tpu.vector_store %arg15[%c0, %c0_3], %11 {strides = array<i32>} : memref<32x128xf32, #tpu.memory_space<vmem>>, vector<32x128xf32>,
    } else {
    }
    %3 = arith.index_cast %arg0 : i32 to index
    %4 = memref.load %arg3[%3] : memref<3xi32, #tpu.memory_space<smem>>
    %5 = arith.cmpi slt, %arg1, %4 : i32
    %6 = arith.extui %5 : i1 to i32
    %c0_i32_1 = arith.constant 0 : i32
    %7 = arith.cmpi ne, %6, %c0_i32_1 : i32
    scf.if %7 {
      %c0 = arith.constant 0 : index
      %c0_3 = arith.constant 0 : index
      %11 = vector.load %arg6[%c0, %c0_3] : memref<1x256xi32, #tpu.memory_space<vmem>>, vector<1x256xi32>
      %c32_i32 = arith.constant 32 : i32
      %12 = arith.muli %arg0, %c32_i32 : i32
      %13 = vector.broadcast %12 : i32 to vector<1x256xi32>
      %14 = arith.subi %11, %13 : vector<1x256xi32>
      %15 = tpu.iota {dimensions = array<i32: 0>} : vector<32x256xi32>
      %16 = vector.broadcast %14 : vector<1x256xi32> to vector<32x256xi32>
      %17 = arith.cmpi eq, %15, %16 : vector<32x256xi32>
      %18 = arith.extui %17 : vector<32x256xi1> to vector<32x256xi32>
      %19 = arith.sitofp %18 : vector<32x256xi32> to vector<32x256xf32>
      %20 = arith.truncf %19 : vector<32x256xf32> to vector<32x256xbf16>
      %c0_4 = arith.constant 0 : index
      %c0_5 = arith.constant 0 : index
      %21 = vector.load %arg15[%c0_4, %c0_5] : memref<32x128xf32, #tpu.memory_space<vmem>>, vector<32x128xf32>
      %c0_6 = arith.constant 0 : index
      %c0_7 = arith.constant 0 : index
      %22 = vector.load %arg5[%c0_6, %c0_7] : memref<256x128xf32, #tpu.memory_space<vmem>>, vector<256x128xf32>
      %23 = arith.truncf %22 : vector<256x128xf32> to vector<256x128xbf16>
      %cst = arith.constant dense<0.000000e+00> : vector<32x128xf32>
      %24 = tpu.matmul %20, %23, %cst {dimension_numbers = #tpu.dot_dimension_numbers<[1], [0], [0], [1], [0, 0, 1, 1], [], []>} : vector<32x256xbf16>, vector<256x128xbf16>, vector<32x128xf32> -> vector<32x128xf32>
      %25 = arith.addf %21, %24 : vector<32x128xf32>
      %c0_8 = arith.constant 0 : index
      %c0_9 = arith.constant 0 : index
      %26 = vector.load %arg15[%c0_8, %c0_9] : memref<32x128xf32, #tpu.memory_space<vmem>>, vector<32x128xf32>
      tpu.vector_store %arg15[%c0_8, %c0_9], %25 {strides = array<i32>} : memref<32x128xf32, #tpu.memory_space<vmem>>, vector<32x128xf32>,
    } else {
    }
    %c2_i32 = arith.constant 2 : i32
    %8 = arith.cmpi eq, %arg1, %c2_i32 : i32
    %9 = arith.extui %8 : i1 to i32
    %c0_i32_2 = arith.constant 0 : i32
    %10 = arith.cmpi ne, %9, %c0_i32_2 : i32
    scf.if %10 {
      %c0 = arith.constant 0 : index
      %c0_3 = arith.constant 0 : index
      %11 = vector.load %arg15[%c0, %c0_3] : memref<32x128xf32, #tpu.memory_space<vmem>>, vector<32x128xf32>
      %c0_4 = arith.constant 0 : index
      %c0_5 = arith.constant 0 : index
      %12 = vector.load %arg4[%c0_4, %c0_5] : memref<32x128xf32, #tpu.memory_space<vmem>>, vector<32x128xf32>
      %13 = arith.truncf %12 : vector<32x128xf32> to vector<32x128xbf16>
      %c0_6 = arith.constant 0 : index
      %c0_7 = arith.constant 0 : index
      %14 = vector.load %arg7[%c0_6, %c0_7] : memref<128x128xbf16, #tpu.memory_space<vmem>>, vector<128x128xbf16>
      %cst = arith.constant dense<0.000000e+00> : vector<32x128xf32>
      %15 = tpu.matmul %13, %14, %cst {dimension_numbers = #tpu.dot_dimension_numbers<[1], [0], [0], [1], [0, 0, 1, 1], [], []>} : vector<32x128xbf16>, vector<128x128xbf16>, vector<32x128xf32> -> vector<32x128xf32>
      %16 = arith.truncf %11 : vector<32x128xf32> to vector<32x128xbf16>
      %c0_8 = arith.constant 0 : index
      %c0_9 = arith.constant 0 : index
      %17 = vector.load %arg8[%c0_8, %c0_9] : memref<128x128xbf16, #tpu.memory_space<vmem>>, vector<128x128xbf16>
      %cst_10 = arith.constant dense<0.000000e+00> : vector<32x128xf32>
      %18 = tpu.matmul %16, %17, %cst_10 {dimension_numbers = #tpu.dot_dimension_numbers<[1], [0], [0], [1], [0, 0, 1, 1], [], []>} : vector<32x128xbf16>, vector<128x128xbf16>, vector<32x128xf32> -> vector<32x128xf32>
      %19 = arith.addf %15, %18 : vector<32x128xf32>
      %c0_11 = arith.constant 0 : index
      %c0_12 = arith.constant 0 : index
      %20 = vector.load %arg9[%c0_11, %c0_12] : memref<1x128xf32, #tpu.memory_space<vmem>>, vector<1x128xf32>
      %21 = vector.broadcast %20 : vector<1x128xf32> to vector<32x128xf32>
      %22 = arith.addf %19, %21 : vector<32x128xf32>
      %cst_13 = arith.constant 0.000000e+00 : f32
      %23 = vector.broadcast %cst_13 : f32 to vector<32x128xf32>
      %24 = arith.maximumf %22, %23 : vector<32x128xf32>
      %25 = arith.truncf %24 : vector<32x128xf32> to vector<32x128xbf16>
      %c0_14 = arith.constant 0 : index
      %c0_15 = arith.constant 0 : index
      %26 = vector.load %arg10[%c0_14, %c0_15] : memref<128x128xbf16, #tpu.memory_space<vmem>>, vector<128x128xbf16>
      %cst_16 = arith.constant dense<0.000000e+00> : vector<32x128xf32>
      %27 = tpu.matmul %25, %26, %cst_16 {dimension_numbers = #tpu.dot_dimension_numbers<[1], [0], [0], [1], [0, 0, 1, 1], [], []>} : vector<32x128xbf16>, vector<128x128xbf16>, vector<32x128xf32> -> vector<32x128xf32>
      %c0_17 = arith.constant 0 : index
      %c0_18 = arith.constant 0 : index
      %28 = vector.load %arg11[%c0_17, %c0_18] : memref<1x128xf32, #tpu.memory_space<vmem>>, vector<1x128xf32>
      %29 = vector.broadcast %28 : vector<1x128xf32> to vector<32x128xf32>
      %30 = arith.addf %27, %29 : vector<32x128xf32>
      %c0_19 = arith.constant 0 : index
      %c0_20 = arith.constant 0 : index
      %31 = vector.load %arg12[%c0_19, %c0_20] : memref<1x128xf32, #tpu.memory_space<vmem>>, vector<1x128xf32>
      %c0_21 = arith.constant 0 : index
      %c0_22 = arith.constant 0 : index
      %32 = vector.load %arg13[%c0_21, %c0_22] : memref<1x128xf32, #tpu.memory_space<vmem>>, vector<1x128xf32>
      %33 = tpu.iota {dimensions = array<i32: 1>} : vector<1x128xi32>
      %c32_i32 = arith.constant 32 : i32
      %34 = vector.broadcast %c32_i32 : i32 to vector<1x128xi32>
      %35 = arith.cmpi slt, %33, %34 : vector<1x128xi32>
      %36 = arith.extui %35 : vector<1x128xi1> to vector<1x128xi32>
      %37 = arith.sitofp %36 : vector<1x128xi32> to vector<1x128xf32>
      %38 = vector.broadcast %37 : vector<1x128xf32> to vector<32x128xf32>
      %39 = arith.mulf %30, %38 : vector<32x128xf32>
      %cst_23 = arith.constant dense<0.000000e+00> : vector<32xf32>
      %40 = vector.multi_reduction <add>, %39, %cst_23 [1] : vector<32x128xf32> to vector<32xf32>
      %41 = vector.shape_cast %40 : vector<32xf32> to vector<32x1xf32>
      %cst_24 = arith.constant 3.125000e-02 : f32
      %42 = vector.broadcast %cst_24 : f32 to vector<32x1xf32>
      %43 = arith.mulf %41, %42 : vector<32x1xf32>
      %44 = vector.broadcast %43 : vector<32x1xf32> to vector<32x128xf32>
      %45 = arith.subf %30, %44 : vector<32x128xf32>
      %46 = vector.broadcast %37 : vector<1x128xf32> to vector<32x128xf32>
      %47 = arith.mulf %45, %46 : vector<32x128xf32>
      %48 = arith.mulf %47, %47 : vector<32x128xf32>
      %cst_25 = arith.constant dense<0.000000e+00> : vector<32xf32>
      %49 = vector.multi_reduction <add>, %48, %cst_25 [1] : vector<32x128xf32> to vector<32xf32>
      %50 = vector.shape_cast %49 : vector<32xf32> to vector<32x1xf32>
      %cst_26 = arith.constant 3.125000e-02 : f32
      %51 = vector.broadcast %cst_26 : f32 to vector<32x1xf32>
      %52 = arith.mulf %50, %51 : vector<32x1xf32>
      %cst_27 = arith.constant 9.99999974E-6 : f32
      %53 = vector.broadcast %cst_27 : f32 to vector<32x1xf32>
      %54 = arith.addf %52, %53 : vector<32x1xf32>
      %55 = math.rsqrt %54 : vector<32x1xf32>
      %56 = vector.broadcast %55 : vector<32x1xf32> to vector<32x128xf32>
      %57 = arith.mulf %47, %56 : vector<32x128xf32>
      %58 = vector.broadcast %31 : vector<1x128xf32> to vector<32x128xf32>
      %59 = arith.mulf %57, %58 : vector<32x128xf32>
      %60 = vector.broadcast %32 : vector<1x128xf32> to vector<32x128xf32>
      %61 = arith.addf %59, %60 : vector<32x128xf32>
      %c0_28 = arith.constant 0 : index
      %c0_29 = arith.constant 0 : index
      %62 = vector.load %arg4[%c0_28, %c0_29] : memref<32x128xf32, #tpu.memory_space<vmem>>, vector<32x128xf32>
      %63 = arith.addf %62, %61 : vector<32x128xf32>
      %c0_30 = arith.constant 0 : index
      %c0_31 = arith.constant 0 : index
      %64 = vector.load %arg14[%c0_30, %c0_31] : memref<32x128xf32, #tpu.memory_space<vmem>>, vector<32x128xf32>
      tpu.vector_store %arg14[%c0_30, %c0_31], %63 {strides = array<i32>} : memref<32x128xf32, #tpu.memory_space<vmem>>, vector<32x128xf32>,
    } else {
    }
    return
  }
  func.func @transform_0(%arg0: i32, %arg1: i32, %arg2: memref<3xi32, #tpu.memory_space<smem>>, %arg3: memref<3xi32, #tpu.memory_space<smem>>) -> (i32, i32) {
    %c0_i32 = arith.constant 0 : i32
    %c0_i32_0 = arith.constant 0 : i32
    return %arg0, %c0_i32 : i32, i32
  }
  func.func @transform_1(%arg0: i32, %arg1: i32, %arg2: memref<3xi32, #tpu.memory_space<smem>>, %arg3: memref<3xi32, #tpu.memory_space<smem>>) -> (i32, i32) {
    %0 = arith.index_cast %arg0 : i32 to index
    %1 = memref.load %arg2[%0] : memref<3xi32, #tpu.memory_space<smem>>
    %2 = arith.index_cast %arg0 : i32 to index
    %3 = memref.load %arg3[%2] : memref<3xi32, #tpu.memory_space<smem>>
    %c1_i32 = arith.constant 1 : i32
    %4 = arith.subi %3, %c1_i32 : i32
    %c0_i32 = arith.constant 0 : i32
    %5 = arith.maxsi %4, %c0_i32 : i32
    %6 = arith.minsi %arg1, %5 : i32
    %7 = arith.addi %1, %6 : i32
    %c0_i32_0 = arith.constant 0 : i32
    %c0_i32_1 = arith.constant 0 : i32
    return %7, %c0_i32_0 : i32, i32
  }
  func.func @transform_2(%arg0: i32, %arg1: i32, %arg2: memref<3xi32, #tpu.memory_space<smem>>, %arg3: memref<3xi32, #tpu.memory_space<smem>>) -> (i32, i32) {
    %0 = arith.index_cast %arg0 : i32 to index
    %1 = memref.load %arg2[%0] : memref<3xi32, #tpu.memory_space<smem>>
    %2 = arith.index_cast %arg0 : i32 to index
    %3 = memref.load %arg3[%2] : memref<3xi32, #tpu.memory_space<smem>>
    %c1_i32 = arith.constant 1 : i32
    %4 = arith.subi %3, %c1_i32 : i32
    %c0_i32 = arith.constant 0 : i32
    %5 = arith.maxsi %4, %c0_i32 : i32
    %6 = arith.minsi %arg1, %5 : i32
    %7 = arith.addi %1, %6 : i32
    %c0_i32_0 = arith.constant 0 : i32
    %c0_i32_1 = arith.constant 0 : i32
    return %c0_i32_0, %7 : i32, i32
  }
  func.func @transform_3(%arg0: i32, %arg1: i32, %arg2: memref<3xi32, #tpu.memory_space<smem>>, %arg3: memref<3xi32, #tpu.memory_space<smem>>) -> (i32, i32) {
    %c0_i32 = arith.constant 0 : i32
    %c0_i32_0 = arith.constant 0 : i32
    %c0_i32_1 = arith.constant 0 : i32
    return %c0_i32, %c0_i32_0 : i32, i32
  }
  func.func @transform_4(%arg0: i32, %arg1: i32, %arg2: memref<3xi32, #tpu.memory_space<smem>>, %arg3: memref<3xi32, #tpu.memory_space<smem>>) -> (i32, i32) {
    %c0_i32 = arith.constant 0 : i32
    %c0_i32_0 = arith.constant 0 : i32
    %c0_i32_1 = arith.constant 0 : i32
    return %c0_i32, %c0_i32_0 : i32, i32
  }
  func.func @transform_5(%arg0: i32, %arg1: i32, %arg2: memref<3xi32, #tpu.memory_space<smem>>, %arg3: memref<3xi32, #tpu.memory_space<smem>>) -> (i32, i32) {
    %c0_i32 = arith.constant 0 : i32
    %c0_i32_0 = arith.constant 0 : i32
    %c0_i32_1 = arith.constant 0 : i32
    return %c0_i32, %c0_i32_0 : i32, i32
  }
  func.func @transform_6(%arg0: i32, %arg1: i32, %arg2: memref<3xi32, #tpu.memory_space<smem>>, %arg3: memref<3xi32, #tpu.memory_space<smem>>) -> (i32, i32) {
    %c0_i32 = arith.constant 0 : i32
    %c0_i32_0 = arith.constant 0 : i32
    %c0_i32_1 = arith.constant 0 : i32
    return %c0_i32, %c0_i32_0 : i32, i32
  }
  func.func @transform_7(%arg0: i32, %arg1: i32, %arg2: memref<3xi32, #tpu.memory_space<smem>>, %arg3: memref<3xi32, #tpu.memory_space<smem>>) -> (i32, i32) {
    %c0_i32 = arith.constant 0 : i32
    %c0_i32_0 = arith.constant 0 : i32
    %c0_i32_1 = arith.constant 0 : i32
    return %c0_i32, %c0_i32_0 : i32, i32
  }
  func.func @transform_8(%arg0: i32, %arg1: i32, %arg2: memref<3xi32, #tpu.memory_space<smem>>, %arg3: memref<3xi32, #tpu.memory_space<smem>>) -> (i32, i32) {
    %c0_i32 = arith.constant 0 : i32
    %c0_i32_0 = arith.constant 0 : i32
    %c0_i32_1 = arith.constant 0 : i32
    return %c0_i32, %c0_i32_0 : i32, i32
  }
  func.func @transform_9(%arg0: i32, %arg1: i32, %arg2: memref<3xi32, #tpu.memory_space<smem>>, %arg3: memref<3xi32, #tpu.memory_space<smem>>) -> (i32, i32) {
    %c0_i32 = arith.constant 0 : i32
    %c0_i32_0 = arith.constant 0 : i32
    %c0_i32_1 = arith.constant 0 : i32
    return %c0_i32, %c0_i32_0 : i32, i32
  }
  func.func @transform_10(%arg0: i32, %arg1: i32, %arg2: memref<3xi32, #tpu.memory_space<smem>>, %arg3: memref<3xi32, #tpu.memory_space<smem>>) -> (i32, i32) {
    %c0_i32 = arith.constant 0 : i32
    %c0_i32_0 = arith.constant 0 : i32
    return %arg0, %c0_i32 : i32, i32
  }
}

</mosaic_0001>

<bundles_post_ra>
// kernel: custom-call
= control target key start
LH: loop header
LB: loop body
LE: loop exit
PB: predicated region body
PF: predicated region fallthrough
CT: control target
= control target key end

     0   :  { %s6_s0 = inlined_call_operand.vmem [shape: u32[3], index: 0, kind: output, shape index: {}]  }

// kernel: graph_nets_conv.3
= control target key start
LH: loop header
LB: loop body
LE: loop exit
PB: predicated region body
PF: predicated region fallthrough
CT: control target
= control target key end

     0   :  { %s1935_s0 = inlined_call_operand.vmem [shape: s32[3], index: 0, kind: input, shape index: {}]   ;;  %s1936_s2 = inlined_call_operand.vmem [shape: f32[96,128], index: 2, kind: input, shape index: {}]   ;;  %s1937_s3 = inlined_call_operand.vmem [shape: f32[768,128], index: 3, kind: input, shape index: {}]   ;;  %s1938_s4 = inlined_call_operand.vmem [shape: s32[1,768], index: 4, kind: input, shape index: {}]   ;;  %s1939_s5 = inlined_call_operand.vmem [shape: bf16[128,128], index: 5, kind: input, shape index: {}]   ;;  %s1940_s6 = inlined_call_operand.vmem [shape: bf16[128,128], index: 6, kind: input, shape index: {}]   ;;  %s1941_s7 = inlined_call_operand.vmem [shape: f32[1,128], index: 7, kind: input, shape index: {}]   ;;  %s1942_s8 = inlined_call_operand.vmem [shape: bf16[128,128], index: 8, kind: input, shape index: {}]   ;;  %s1943_s9 = inlined_call_operand.vmem [shape: f32[1,128], index: 9, kind: input, shape index: {}]   ;;  %s1944_s10 = inlined_call_operand.vmem [shape: f32[1,128], index: 10, kind: input, shape index: {}]   ;;  %s1945_s11 = inlined_call_operand.vmem [shape: f32[1,128], index: 11, kind: input, shape index: {}]   ;;  %s1946_s12 = inlined_call_operand.vmem [shape: f32[96,128], index: 12, kind: output, shape index: {}]   ;;  %s1947_s1 = inlined_call_operand.vmem [shape: s32[3], index: 1, kind: input, shape index: {}]  }
   0x1   :  { %1949 = sst [smem:[#allocation10_spill]] %s1936_s2  ;;  %s17_s23 = sshll.u32 %s1935_s0, 4  ;;  %s18_s23 = int_to_ptr.vmem [resolvable:$true] %s17_s23 }
   0x2   :  { %1950 = sst [smem:[#allocation11_spill]] %s1946_s12  ;;  %s21_s26 = sshll.u32 %s1947_s1, 4  ;;  %s22_s26 = int_to_ptr.vmem [resolvable:$true] %s21_s26 }
   0x3   :  { %s1547_s27 = scalar_lea.vmem %s18_s23, 16  ;;  %p1552_p1 = scmp.lt.s32.totalorder %s18_s23, %s18_s23 }
   0x4   :  { %p1548_p0 = scmp.ne.s32.totalorder %s18_s23, %s1547_s27  ;;  %p1553_p2 = scmp.lt.s32.totalorder %s1547_s27, %s1547_s27 }
   0x6   :  { %p1554_p3 = por %p1553_p2, %p1552_p1 }
   0x8   :  { %p1555_p4 = pnand %p1554_p3, %p1548_p0 }
   0xa   :  { %1558 = shalt.err (!%p1555_p4)  }
   0xb   :  { %s1613_s28 = smov [#allocation4]   ;;  %s1559_s29 = scalar_lea.vmem %s22_s26, 16 }
   0xc   :  { %20 = dma.vmem_to_smem %s18_s23, 16, %s1613_s28, [#allocation3] }
   0xd   :  { %p1560_p5 = scmp.ne.s32.totalorder %s22_s26, %s1559_s29  ;;  %p1564_p6 = scmp.lt.s32.totalorder %s22_s26, %s22_s26 }
   0xe   :  { %p1565_p7 = scmp.lt.s32.totalorder %s1559_s29, %s1559_s29 }
  0x10   :  { %p1566_p8 = por %p1565_p7, %p1564_p6 }
  0x12   :  { %p1567_p9 = pnand %p1566_p8, %p1560_p5 }
  0x14   :  { %1570 = shalt.err (!%p1567_p9)  }
  0x15   :  { %s1614_s0 = smov [#allocation5]  }
  0x16   :  { %24 = dma.vmem_to_smem %s22_s26, 16, %s1614_s0, [#allocation3] }
  0x17   :  { %1591 = dma.done.wait [#allocation3], 32 }
  0x18   :  { %1592 = vsyncadd [#allocation3], 4294967264 }
  0x19   :  { %26 = sfence }
  0x1a   :  { %s1689_s1 = smov 0   ;;  %s1691_s30 = smov 0  }
  0x1b   :  { %s1693_s13 = smov 0   ;;  %s1695_s14 = smov 0  }
  0x1c   :  { %s1697_s15 = smov 0  }
  0x1d LB: > { %1951 = sst [smem:[#allocation7_spill]] %s1607_s14  ;;  %s41_s16 = sadd.s32 1, %s1603_s13  ;;  %s1611_s15 = sphi %s1697_s15, %s32_s15   ;;  %s1607_s14 = sphi %s1695_s14, %s1958_s14   ;;  %s1603_s13 = sphi %s1693_s13, %s1960_s13   ;;  %s1599_s30 = sphi %s1691_s30, %s1956_s30   ;;  %s1595_s1 = sphi %s1689_s1, %s1959_s1  }
  0x1e   : > { %s44_s17 = sadd.s32 1, %s1607_s14  ;;  %p42_p10 = scmp.ge.s32.totalorder %s41_s16, 3 }
  0x1f   : > { %p1271_p11 = scmp.ge.s32.totalorder %s1611_s15, 1  ;;  %p422_p12 = scmp.lt.s32.totalorder %s1611_s15, 10 }
  0x20   : > { %s1962_s16 = smov (%p42_p10, %s41_s16), 0  ;;  %s1964_s17 = smov (!%p42_p10, %s44_s17), %s1607_s14 }
  0x21   : > { %1952 = sst [smem:[#allocation8_spill]] %s1962_s16  ;;  %p423_p13 = pnand %p1271_p11, %p422_p12 }
  0x22   : > { %p46_p0 = scmp.ge.s32.totalorder %s1964_s17, 3  ;;  %s1272_s18 = sshll.u32 (!%p423_p13), %s1599_s30, 2 }
  0x23   : > { %426 = sbr.rel (%p423_p13) target bundleno = 1149 (0x47d), region = 60  ;;  %p486_p1 = scmp.lt.s32.totalorder (!%p423_p13), %s1272_s18, 11 }
  0x24   : > { %s1966_s17 = smov (%p46_p0, %s1964_s17), 0  ;;  %s492_s19 = sld [smem:[#allocation5 + %s1599_s30]] (!%p423_p13) }
  0x25   : > { %1953 = sst [smem:[#allocation9_spill]] %s1966_s17  ;;  %s1954_s2 = sld [smem:[#allocation10_spill]] (!%p423_p13) }
  0x26   : > { %s514_s20 = sld [smem:[#allocation5 + %s1599_s30]] (!%p423_p13)  ;;  %p1281_p8 = scmp.ne.s32.totalorder (!%p423_p13), %s1595_s1, 0 }
  0x27   : > { %s1955_s12 = sld [smem:[#allocation11_spill]] (!%p423_p13) }
  0x28   : > { %s491_s28 = sld [smem:[#allocation4 + %s1599_s30]] (!%p423_p13) }
  0x29   : > { %s513_s17 = sld [smem:[#allocation4 + %s1599_s30]] (!%p423_p13) }
  0x2a   : > { %s1968_s18 = smov (!%p486_p1, %s1272_s18), 11  ;;  %s1274_s29 = sadd.s32 4294967295, %s492_s19  ;;  %v1615_v0 = vmov (!%p1281_p8), 0.0  }
  0x2b   : > { %s1273_s21 = sshll.u32 %s1968_s18, 3  ;;  %p494_p2 = scmp.gt.s32.totalorder %s1274_s29, 0  ;;  %545 = vst [vmem:[#allocation2] sm:$0xff] (!%p1281_p8), %v1615_v0  ;;  %546 = vst [vmem:[#allocation2 + $0x8] sm:$0xff] (!%p1281_p8), %v1615_v0 }
  0x2c   : > { %s1729_s24 = scalar_lea.vmem %s1954_s2, %s1273_s21  ;;  %s1277_s0 = sadd.s32 4294967295, %s514_s20  ;;  %547 = vst [vmem:[#allocation2 + $0x10] sm:$0xff] (!%p1281_p8), %v1615_v0  ;;  %548 = vst [vmem:[#allocation2 + $0x18] sm:$0xff] (!%p1281_p8), %v1615_v0 }
  0x2d   : > { %s1734_s27 = scalar_lea.vmem %s1955_s12, %s1273_s21  ;;  %p516_p3 = scmp.gt.s32.totalorder %s1277_s0, 0 }
  0x2e   : > { %s1970_s29 = smov (!%p494_p2, %s1274_s29), 0 }
  0x2f   : > { %s1972_s0 = smov (!%p516_p3, %s1277_s0), 0  ;;  %p496_p4 = scmp.lt.s32.totalorder %s1595_s1, %s1970_s29 }
  0x30   : > { %p518_p5 = scmp.lt.s32.totalorder %s1595_s1, %s1972_s0 }
  0x31   : > { %s497_s18 = scalar_select %p496_p4, %s1595_s1, %s1970_s29 }
  0x32   : > { %s519_s16 = scalar_select %p518_p5, %s1595_s1, %s1972_s0 }
  0x33   : > { %s498_s22 = sadd.s32 %s497_s18, %s491_s28  ;;  %544 = sbr.rel (%p1281_p8) target bundleno = 58 (0x3a), region = 64 }
  0x34   : > { %s1275_s23 = sshll.u32 %s498_s22, 5  ;;  %s520_s2 = sadd.s32 %s519_s16, %s513_s17 }
  0x35   : > { %p500_p6 = scmp.lt.s32.totalorder %s1275_s23, 95  ;;  %s1278_s14 = sshll.u32 %s520_s2, 1 }
  0x36   : > { %p522_p7 = scmp.lt.s32.totalorder %s1278_s14, 5 }
  0x37   : > { %s1974_s23 = smov (!%p500_p6, %s1275_s23), 95 }
  0x38   : > { %s1976_s14 = smov (!%p522_p7, %s1278_s14), 5  ;;  %s1276_s19 = sshll.u32 %s1974_s23, 3 }
  0x39   : > { %s1747_s25 = scalar_lea.vmem %s1937_s3, %s1276_s19  ;;  %s524_s29 = scalar_lea.vmem %s1938_s4, %s1976_s14 }
  0x3a PF: > { %s549_s2 = sld [smem:[#allocation5 + %s1599_s30]] }
  0x40   : > { %p1282_p9 = scmp.ge.s32.totalorder %s1595_s1, %s549_s2 }
  0x41   : > { %v619_v1 = vld [vmem:[%s1747_s25 + $0x80] sm:$0xff] (!%p1282_p9)  ;;  %v620_v2 = vld [vmem:[%s1747_s25 + $0x88] sm:$0xff] (!%p1282_p9)  ;;  %v621_v6 = vld [vmem:[%s1747_s25 + $0x90] sm:$0xff] (!%p1282_p9)  ;;  %v558_v8 = vlaneseq (!%p1282_p9)  ;;  %s1283_s12 = sshll.u32 (!%p1282_p9), %s1599_s30, 5  ;;  %v1616_v48 = vmov (!%p1282_p9), 1.0|1.0  }
  0x42   : > { %553 = sbr.rel (%p1282_p9) target bundleno = 320 (0x140), region = 68  ;;  %v603_v3 = vld [vmem:[%s1747_s25] sm:$0xff] (!%p1282_p9)  ;;  %v643_v4 = vpack.c.bf16 (!%p1282_p9), %v620_v2, %v619_v1  ;;  %v604_v5 = vld [vmem:[%s1747_s25 + $0x8] sm:$0xff] (!%p1282_p9)  ;;  %v622_v7 = vld [vmem:[%s1747_s25 + $0x98] sm:$0xff] (!%p1282_p9)  ;;  %v556_v23 = vstv (!%p1282_p9), %s1283_s12 }
  0x43   : > { %v635_v9 = vpack.c.bf16 (!%p1282_p9), %v604_v5, %v603_v3  ;;  %v644_v10 = vpack.c.bf16 (!%p1282_p9), %v622_v7, %v621_v6  ;;  %v605_v11 = vld [vmem:[%s1747_s25 + $0x10] sm:$0xff] (!%p1282_p9)  ;;  %v606_v12 = vld [vmem:[%s1747_s25 + $0x18] sm:$0xff] (!%p1282_p9)  ;;  %v623_v13 = vld [vmem:[%s1747_s25 + $0xa0] sm:$0xff] (!%p1282_p9)  ;;  %v1769_v19 = vshrl.u32 (!%p1282_p9), %v558_v8, 7 }
  0x44   : > { %1332 = vmatprep.subr.bf16.mxu0 (!%p1282_p9), %v643_v4  ;;  %1450 = vmatprep.subr.bf16.mxu1 (!%p1282_p9), %v643_v4  ;;  %v624_v14 = vld [vmem:[%s1747_s25 + $0xa8] sm:$0xff] (!%p1282_p9)  ;;  %v636_v15 = vpack.c.bf16 (!%p1282_p9), %v606_v12, %v605_v11  ;;  %v607_v17 = vld [vmem:[%s1747_s25 + $0x20] sm:$0xff] (!%p1282_p9)  ;;  %v625_v20 = vld [vmem:[%s1747_s25 + $0xb0] sm:$0xff] (!%p1282_p9) }
  0x45   : > { %1333 = vmatpush3.bf16.msra.mxu0 (!%p1282_p9), %v635_v9  ;;  %1458 = vmatpush3.bf16.msra.mxu1 (!%p1282_p9), %v635_v9  ;;  %v645_v16 = vpack.c.bf16 (!%p1282_p9), %v624_v14, %v623_v13  ;;  %v608_v18 = vld [vmem:[%s1747_s25 + $0x28] sm:$0xff] (!%p1282_p9)  ;;  %v626_v21 = vld [vmem:[%s1747_s25 + $0xb8] sm:$0xff] (!%p1282_p9)  ;;  %v609_v25 = vld [vmem:[%s1747_s25 + $0x30] sm:$0xff] (!%p1282_p9)  ;;  %v569_v27 = vsub.s32 (!%p1282_p9), 1, %v1769_v19  ;;  %v560_v32 = vadd.s32 (!%p1282_p9), 8, %v1769_v19  ;;  %v1785_v33 = vadd.s32 (!%p1282_p9), 16, %v1769_v19 }
  0x46   : > { %1334 = vmatprep.subr.bf16.mxu0 (!%p1282_p9), %v644_v10  ;;  %1451 = vmatprep.subr.bf16.mxu1 (!%p1282_p9), %v644_v10  ;;  %v637_v22 = vpack.c.bf16 (!%p1282_p9), %v608_v18, %v607_v17  ;;  %v646_v24 = vpack.c.bf16 (!%p1282_p9), %v626_v21, %v625_v20  ;;  %v610_v26 = vld [vmem:[%s1747_s25 + $0x38] sm:$0xff] (!%p1282_p9)  ;;  %v627_v28 = vld [vmem:[%s1747_s25 + $0xc0] sm:$0xff] (!%p1282_p9)  ;;  %v628_v29 = vld [vmem:[%s1747_s25 + $0xc8] sm:$0xff] (!%p1282_p9)  ;;  %v1788_v34 = vadd.s32 (!%p1282_p9), 24, %v1769_v19  ;;  %v565_v50 = vsub.s32 (!%p1282_p9), 0, %v1769_v19 }
  0x47   : > { %v554_v30 = vld [vmem:[%s524_s29] sm:$0x3] (!%p1282_p9)  ;;  %v638_v35 = vpack.c.bf16 (!%p1282_p9), %v610_v26, %v609_v25  ;;  %v647_v36 = vpack.c.bf16 (!%p1282_p9), %v628_v29, %v627_v28  ;;  %v612_v38 = vld [vmem:[%s1747_s25 + $0x48] sm:$0xff] (!%p1282_p9)  ;;  %v629_v40 = vld [vmem:[%s1747_s25 + $0xd0] sm:$0xff] (!%p1282_p9) }
  0x48   : > { %v557_v31 = vsub.s32 (!%p1282_p9), %v554_v30, %v556_v23  ;;  %v611_v37 = vld [vmem:[%s1747_s25 + $0x40] sm:$0xff] (!%p1282_p9)  ;;  %v630_v41 = vld [vmem:[%s1747_s25 + $0xd8] sm:$0xff] (!%p1282_p9)  ;;  %v613_v44 = vld [vmem:[%s1747_s25 + $0x50] sm:$0xff] (!%p1282_p9) }
  0x49   : > { %1335 = vmatpush3.bf16.msra.mxu0 %v636_v15  ;;  %1459 = vmatpush3.bf16.msra.mxu1 %v636_v15  ;;  %v639_v42 = vpack.c.bf16 %v612_v38, %v611_v37  ;;  %v648_v43 = vpack.c.bf16 %v630_v41, %v629_v40  ;;  %v614_v45 = vld [vmem:[%s1747_s25 + $0x58] sm:$0xff]  ;;  %v631_v46 = vld [vmem:[%s1747_s25 + $0xe0] sm:$0xff]  ;;  %v632_v47 = vld [vmem:[%s1747_s25 + $0xe8] sm:$0xff] }
  0x4a   : > { %1336 = vmatprep.subr.bf16.mxu0 %v645_v16  ;;  %1452 = vmatprep.subr.bf16.mxu1 %v645_v16  ;;  %v570_v39 = vrot.slane %v557_v31, %v569_v27  ;;  %v640_v49 = vpack.c.bf16 %v614_v45, %v613_v44  ;;  %v649_v51 = vpack.c.bf16 %v632_v47, %v631_v46  ;;  %v615_v52 = vld [vmem:[%s1747_s25 + $0x60] sm:$0xff]  ;;  %v616_v53 = vld [vmem:[%s1747_s25 + $0x68] sm:$0xff]  ;;  %v633_v54 = vld [vmem:[%s1747_s25 + $0xf0] sm:$0xff] }
  0x4b   : > { %v634_v55 = vld [vmem:[%s1747_s25 + $0xf8] sm:$0xff]  ;;  %v641_v56 = vpack.c.bf16 %v616_v53, %v615_v52  ;;  %v566_v57 = vrot.slane %v557_v31, %v565_v50  ;;  %v617_v59 = vld [vmem:[%s1747_s25 + $0x70] sm:$0xff]  ;;  %v599_v0 = vld [vmem:[#allocation2] sm:$0xff] }
  0x4c   : > { %vm572_vm0 = vcmp.eq.s32.totalorder %v1769_v19, %v570_v39  ;;  %vm574_vm1 = vcmp.eq.s32.totalorder %v560_v32, %v570_v39  ;;  %vm576_vm2 = vcmp.eq.s32.totalorder %v1785_v33, %v570_v39  ;;  %vm578_vm3 = vcmp.eq.s32.totalorder %v1788_v34, %v570_v39  ;;  %v618_v60 = vld [vmem:[%s1747_s25 + $0x78] sm:$0xff]  ;;  %v601_v2 = vld [vmem:[#allocation2 + $0x10] sm:$0xff]  ;;  %v600_v8 = vld [vmem:[#allocation2 + $0x8] sm:$0xff] }
  0x4d   : > { %1337 = vmatpush3.bf16.msra.mxu0 %v637_v22  ;;  %1460 = vmatpush3.bf16.msra.mxu1 %v637_v22  ;;  %vm1292_vm4 = vmpackc.low %vm574_vm1, %vm572_vm0  ;;  %v650_v58 = vpack.c.bf16 %v634_v55, %v633_v54  ;;  %v642_v61 = vpack.c.bf16 %v618_v60, %v617_v59  ;;  %vm571_vm6 = vcmp.eq.s32.totalorder %v1769_v19, %v566_v57  ;;  %v602_v10 = vld [vmem:[#allocation2 + $0x18] sm:$0xff] }
  0x4e   : > { %1338 = vmatprep.subr.bf16.mxu0 %v646_v24  ;;  %1453 = vmatprep.subr.bf16.mxu1 %v646_v24  ;;  %vm1296_vm5 = vmpackc.low %vm578_vm3, %vm576_vm2  ;;  %vm573_vm7 = vcmp.eq.s32.totalorder %v560_v32, %v566_v57  ;;  %vm575_vm8 = vcmp.eq.s32.totalorder %v1785_v33, %v566_v57  ;;  %vm577_vm9 = vcmp.eq.s32.totalorder %v1788_v34, %v566_v57 }
  0x4f   : > { %1293 = vmatprep.mubr.msk.bf16.mxu0 %vm1292_vm4, %v1616_v48  ;;  %1297 = vmatprep.mubr.msk.bf16.mxu1 %vm1296_vm5, %v1616_v48  ;;  %vm1294_vm10 = vmpackc.low %vm573_vm7, %vm571_vm6 }
  0x50   : > { %vm1298_vm11 = vmpackc.low %vm577_vm9, %vm575_vm8 }
  0x51   : > { %1339 = vmatpush3.bf16.msra.mxu0 %v638_v35  ;;  %1461 = vmatpush3.bf16.msra.mxu1 %v638_v35 }
  0x52   : > { %1340 = vmatprep.subr.bf16.mxu0 %v647_v36  ;;  %1454 = vmatprep.subr.bf16.mxu1 %v647_v36 }
  0x55   : > { %1341 = vmatpush3.bf16.msra.mxu0 %v639_v42  ;;  %1462 = vmatpush3.bf16.msra.mxu1 %v639_v42 }
  0x56   : > { %1342 = vmatprep.subr.bf16.mxu0 %v648_v43  ;;  %1455 = vmatprep.subr.bf16.mxu1 %v648_v43 }
  0x59   : > { %1343 = vmatpush3.bf16.msra.mxu0 %v640_v49  ;;  %1463 = vmatpush3.bf16.msra.mxu1 %v640_v49 }
  0x5a   : > { %1344 = vmatprep.subr.bf16.mxu0 %v649_v51  ;;  %1456 = vmatprep.subr.bf16.mxu1 %v649_v51 }
  0x5d   : > { %1345 = vmatpush3.bf16.msra.mxu0 %v641_v56  ;;  %1464 = vmatpush3.bf16.msra.mxu1 %v641_v56 }
  0x5e   : > { %1346 = vmatprep.subr.bf16.mxu0 %v650_v58  ;;  %1457 = vmatprep.subr.bf16.mxu1 %v650_v58 }
  0x61   : > { %1347 = vmatpush3.bf16.msra.mxu0 %v642_v61  ;;  %1465 = vmatpush3.bf16.msra.mxu1 %v642_v61 }
  0x64   : > { %1295 = vmatmul.mubr.msk.bf16.vlgmr.msra.gmra.mrb[0].mxu0 %vm1294_vm10, %v1616_v48  ;;  %1299 = vmatmul.mubr.msk.bf16.vlgmr.msra.gmra.mrb[0].mxu1 %vm1298_vm11, %v1616_v48 }
 0x137   : > { %v1348_v62 = vpop.f32.mrb[0].mxu0  ;;  %v1354_v63 = vpop.f32.mrb[0].mxu1 }
 0x138   : > { %v1349_v1 = vpop.f32.mrb[1].mxu0  ;;  %v1355_v3 = vpop.f32.mrb[1].mxu1 }
 0x139   : > { %v1350_v4 = vadd.f32 %v1349_v1, %v1348_v62  ;;  %v1356_v5 = vadd.f32 %v1355_v3, %v1354_v63  ;;  %v1351_v6 = vpop.f32.mrb[2].mxu0  ;;  %v1357_v7 = vpop.f32.mrb[2].mxu1 }
 0x13a   : > { %v1352_v9 = vpop.f32.mrb[3].mxu0  ;;  %v1358_v11 = vpop.f32.mrb[3].mxu1 }
 0x13b   : > { %v700_v12 = vadd.f32 %v1350_v4, %v599_v0  ;;  %v702_v13 = vadd.f32 %v1356_v5, %v601_v2  ;;  %v1353_v14 = vadd.f32 %v1352_v9, %v1351_v6  ;;  %v1359_v15 = vadd.f32 %v1358_v11, %v1357_v7 }
 0x13d   : > { %704 = vst [vmem:[#allocation2] sm:$0xff] %v700_v12  ;;  %706 = vst [vmem:[#allocation2 + $0x10] sm:$0xff] %v702_v13  ;;  %v701_v16 = vadd.f32 %v1353_v14, %v600_v8  ;;  %v703_v17 = vadd.f32 %v1359_v15, %v602_v10 }
 0x13f   : > { %705 = vst [vmem:[#allocation2 + $0x8] sm:$0xff] %v701_v16  ;;  %707 = vst [vmem:[#allocation2 + $0x18] sm:$0xff] %v703_v17 }
 0x140 PF: > { %p1300_p10 = scmp.ne.s32.totalorder %s1595_s1, 2 }
 0x141   : > { %v1515_v18 = vld [vmem:[%s1940_s6] sm:$0xff] (!%p1300_p10)   ;;  %v1516_v19 = vld [vmem:[%s1940_s6 + $0x8] sm:$0xff] (!%p1300_p10)   ;;  %v1517_v20 = vld [vmem:[%s1940_s6 + $0x10] sm:$0xff] (!%p1300_p10)   ;;  %v1089_v5 = vlaneseq (!%p1300_p10)  ;;  %v1617_v9 = vmov (!%p1300_p10), 0.0  }
 0x142   : > { %711 = sbr.rel (%p1300_p10) target bundleno = 1149 (0x47d), region = 72  ;;  %1390 = vmatprep.subr.bf16.mxu0 (!%p1300_p10), %v1515_v18  ;;  %v1518_v21 = vld [vmem:[%s1940_s6 + $0x18] sm:$0xff] (!%p1300_p10)   ;;  %v1519_v25 = vld [vmem:[%s1940_s6 + $0x20] sm:$0xff] (!%p1300_p10)   ;;  %v1520_v26 = vld [vmem:[%s1940_s6 + $0x28] sm:$0xff] (!%p1300_p10)  }
 0x143   : > { %1391 = vmatpush3.bf16.msra.mxu0 (!%p1300_p10), %v1515_v18  ;;  %v1521_v27 = vld [vmem:[%s1940_s6 + $0x30] sm:$0xff] (!%p1300_p10)   ;;  %v1531_v28 = vld [vmem:[%s1942_s8] sm:$0xff] (!%p1300_p10)   ;;  %v1532_v29 = vld [vmem:[%s1942_s8 + $0x8] sm:$0xff] (!%p1300_p10)   ;;  %v1090_v6 = vand.u32 (!%p1300_p10), 127, %v1089_v5 }
 0x144   : > { %1392 = vmatprep.subr.bf16.mxu0 (!%p1300_p10), %v1516_v19  ;;  %v712_v22 = vld [vmem:[#allocation2] sm:$0xff] (!%p1300_p10)  ;;  %1430 = vmatprep.subr.bf16.mxu1 (!%p1300_p10), %v1531_v28  ;;  %v1533_v30 = vld [vmem:[%s1942_s8 + $0x10] sm:$0xff] (!%p1300_p10)   ;;  %v1522_v31 = vld [vmem:[%s1940_s6 + $0x38] sm:$0xff] (!%p1300_p10)  }
 0x145   : > { %1431 = vmatpush3.bf16.msra.mxu1 (!%p1300_p10), %v1531_v28  ;;  %v714_v32 = vld [vmem:[#allocation2 + $0x10] sm:$0xff] (!%p1300_p10)  ;;  %v1534_v34 = vld [vmem:[%s1942_s8 + $0x18] sm:$0xff] (!%p1300_p10)   ;;  %v1523_v35 = vld [vmem:[%s1939_s5] sm:$0xff] (!%p1300_p10)   ;;  %vm1091_vm12 = vcmp.lt.s32.totalorder (!%p1300_p10), %v1090_v6, 32 }
 0x146   : > { %v713_v23 = vld [vmem:[#allocation2 + $0x8] sm:$0xff] (!%p1300_p10)  ;;  %1432 = vmatprep.subr.bf16.mxu1 (!%p1300_p10), %v1532_v29  ;;  %v715_v33 = vld [vmem:[#allocation2 + $0x18] sm:$0xff] (!%p1300_p10)  ;;  %v1852_v36 = vld [vmem:[%s1729_s24] sm:$0xff] (!%p1300_p10)  ;;  %v1327_v10 = vsel (!%p1300_p10), %vm1091_vm12, 1.0, %v1617_v9 }
 0x147   : > { %1393 = vmatpush3.bf16.msra.mxu0 (!%p1300_p10), %v1516_v19  ;;  %v738_v24 = vpack.c.bf16 (!%p1300_p10), %v713_v23, %v712_v22  ;;  %v1855_v37 = vld [vmem:[%s1729_s24 + $0x8] sm:$0xff] (!%p1300_p10)  ;;  %v739_v38 = vpack.c.bf16 (!%p1300_p10), %v715_v33, %v714_v32  ;;  %v1535_v41 = vld [vmem:[%s1942_s8 + $0x20] sm:$0xff] (!%p1300_p10)   ;;  %v1525_v43 = vld [vmem:[%s1939_s5 + $0x10] sm:$0xff] (!%p1300_p10)  }
 0x148   : > { %1394 = vmatprep.subr.bf16.mxu0 (!%p1300_p10), %v1517_v20  ;;  %v720_v39 = vpack.c.bf16 (!%p1300_p10), %v1855_v37, %v1852_v36  ;;  %v1524_v40 = vld [vmem:[%s1939_s5 + $0x8] sm:$0xff] (!%p1300_p10)   ;;  %v1526_v44 = vld [vmem:[%s1939_s5 + $0x18] sm:$0xff] (!%p1300_p10)   ;;  %v1527_v45 = vld [vmem:[%s1939_s5 + $0x20] sm:$0xff] (!%p1300_p10)  }
 0x149   : > { %1406 = vmatprep.mubr.bf16.mxu0 %v738_v24  ;;  %1433 = vmatpush3.bf16.msra.mxu1 %v1532_v29  ;;  %v1536_v42 = vld [vmem:[%s1942_s8 + $0x28] sm:$0xff]   ;;  %v1529_v47 = vld [vmem:[%s1939_s5 + $0x30] sm:$0xff]   ;;  %v1530_v48 = vld [vmem:[%s1939_s5 + $0x38] sm:$0xff]  }
 0x14a   : > { %1434 = vmatprep.subr.bf16.mxu1 %v1533_v30  ;;  %v1528_v46 = vld [vmem:[%s1939_s5 + $0x28] sm:$0xff]   ;;  %v1887_v49 = vld [vmem:[%s1729_s24 + $0x10] sm:$0xff]  ;;  %v1890_v50 = vld [vmem:[%s1729_s24 + $0x18] sm:$0xff] }
 0x14b   : > { %1395 = vmatpush3.bf16.msra.mxu0 %v1517_v20  ;;  %v721_v51 = vpack.c.bf16 %v1890_v50, %v1887_v49  ;;  %v1537_v52 = vld [vmem:[%s1942_s8 + $0x30] sm:$0xff]   ;;  %v1538_v53 = vld [vmem:[%s1942_s8 + $0x38] sm:$0xff]   ;;  %v1317_v54 = vld [vmem:[%s1941_s7] ss:$0 sm:$0xff] }
 0x14c   : > { %1396 = vmatprep.subr.bf16.mxu0 %v1518_v21  ;;  %v1318_v7 = vld [vmem:[%s1943_s9] ss:$0 sm:$0xff] }
 0x14d   : > { %1435 = vmatpush3.bf16.msra.mxu1 %v1533_v30 }
 0x14e   : > { %1436 = vmatprep.subr.bf16.mxu1 %v1534_v34 }
 0x14f   : > { %1397 = vmatpush3.bf16.msra.mxu0 %v1518_v21 }
 0x150   : > { %1398 = vmatprep.subr.bf16.mxu0 %v1519_v25 }
 0x151   : > { %1437 = vmatpush3.bf16.msra.mxu1 %v1534_v34 }
 0x152   : > { %1438 = vmatprep.subr.bf16.mxu1 %v1535_v41 }
 0x153   : > { %1399 = vmatpush3.bf16.msra.mxu0 %v1519_v25 }
 0x154   : > { %1400 = vmatprep.subr.bf16.mxu0 %v1520_v26 }
 0x155   : > { %1439 = vmatpush3.bf16.msra.mxu1 %v1535_v41 }
 0x156   : > { %1440 = vmatprep.subr.bf16.mxu1 %v1536_v42 }
 0x157   : > { %1401 = vmatpush3.bf16.msra.mxu0 %v1520_v26 }
 0x158   : > { %1402 = vmatprep.subr.bf16.mxu0 %v1521_v27 }
 0x159   : > { %1441 = vmatpush3.bf16.msra.mxu1 %v1536_v42 }
 0x15a   : > { %1442 = vmatprep.subr.bf16.mxu1 %v1537_v52 }
 0x15b   : > { %1403 = vmatpush3.bf16.msra.mxu0 %v1521_v27 }
 0x15c   : > { %1404 = vmatprep.subr.bf16.mxu0 %v1522_v31 }
 0x15d   : > { %1443 = vmatpush3.bf16.msra.mxu1 %v1537_v52 }
 0x15e   : > { %1444 = vmatprep.subr.bf16.mxu1 %v1538_v53 }
 0x15f   : > { %1405 = vmatpush3.bf16.msra.mxu0 %v1522_v31 }
 0x160   : > { %1410 = vmatprep.subr.bf16.mxu0 %v1523_v35 }
 0x161   : > { %1445 = vmatpush3.bf16.msra.mxu1 %v1538_v53 }
 0x162   : > { %1407 = vmatmul.mubr.bf16.vlgmr.msra.gmra.mrb[0].mxu0 %v739_v38 }
 0x163   : > { %1411 = vmatpush3.bf16.msra.mxu0 %v1523_v35  ;;  %1426 = vmatprep.mubr.bf16.mxu0 %v720_v39 }
 0x164   : > { %1412 = vmatprep.subr.bf16.mxu0 %v1524_v40 }
 0x167   : > { %1413 = vmatpush3.bf16.msra.mxu0 %v1524_v40 }
 0x168   : > { %1414 = vmatprep.subr.bf16.mxu0 %v1525_v43 }
 0x16b   : > { %1415 = vmatpush3.bf16.msra.mxu0 %v1525_v43 }
 0x16c   : > { %1416 = vmatprep.subr.bf16.mxu0 %v1526_v44 }
 0x16f   : > { %1417 = vmatpush3.bf16.msra.mxu0 %v1526_v44 }
 0x170   : > { %1418 = vmatprep.subr.bf16.mxu0 %v1527_v45 }
 0x173   : > { %1419 = vmatpush3.bf16.msra.mxu0 %v1527_v45 }
 0x174   : > { %1420 = vmatprep.subr.bf16.mxu0 %v1528_v46 }
 0x177   : > { %1421 = vmatpush3.bf16.msra.mxu0 %v1528_v46 }
 0x178   : > { %1422 = vmatprep.subr.bf16.mxu0 %v1529_v47 }
 0x17b   : > { %1423 = vmatpush3.bf16.msra.mxu0 %v1529_v47 }
 0x17c   : > { %1424 = vmatprep.subr.bf16.mxu0 %v1530_v48 }
 0x17f   : > { %1425 = vmatpush3.bf16.msra.mxu0 %v1530_v48 }
 0x182   : > { %1427 = vmatmul.mubr.bf16.vlgmr.msra.gmra.mrb[0].mxu0 %v721_v51 }
 0x255   : > { %v1428_v55 = vpop.f32.mrb[0].mxu0 }
 0x256   : > { %v959_v56 = vadd.f32 %v1428_v55, %v1317_v54  ;;  %v935_v57 = vpop.f32.mrb[1].mxu0 }
 0x257   : > { %v957_v58 = vadd.f32 %v1317_v54, %v935_v57  ;;  %v1429_v59 = vpop.f32.mrb[2].mxu0 }
 0x258   : > { %v960_v60 = vadd.f32 %v1429_v59, %v1317_v54  ;;  %v938_v61 = vpop.f32.mrb[3].mxu0  ;;  %v963_v63 = vmax.f32 %v959_v56, 0.0  ;;  %v1328_v59 = vld [vmem:[%s1944_s10] ss:$0 sm:$0xff] }
 0x259   : > { %v958_v62 = vadd.f32 %v1317_v54, %v938_v61  ;;  %v961_v1 = vmax.f32 %v957_v58, 0.0  ;;  %v1329_v61 = vld [vmem:[%s1945_s11] ss:$0 sm:$0xff] }
 0x25a   : > { %v964_v0 = vmax.f32 %v960_v60, 0.0 }
 0x25b   : > { %v962_v2 = vmax.f32 %v958_v62, 0.0 }
 0x25c   : > { %v966_v3 = vpack.c.bf16 %v964_v0, %v963_v63 }
 0x25d   : > { %v965_v4 = vpack.c.bf16 %v962_v2, %v961_v1 }
 0x25f   : > { %1446 = vmatprep.mubr.bf16.mxu1 %v965_v4 }
 0x260   : > { %1447 = vmatmul.mubr.bf16.vlgmr.msra.gmra.mrb[0].mxu1 %v966_v3 }
 0x333   : > { %v1448_v8 = vpop.f32.mrb[0].mxu1 }
 0x334   : > { %v1081_v11 = vadd.f32 %v1448_v8, %v1318_v7  ;;  %v1072_v12 = vpop.f32.mrb[1].mxu1 }
 0x335   : > { %v1073_v13 = vadd.f32 %v1318_v7, %v1072_v12  ;;  %v1449_v14 = vpop.f32.mrb[2].mxu1 }
 0x336   : > { %v1084_v15 = vadd.f32 %v1449_v14, %v1318_v7  ;;  %v1075_v16 = vpop.f32.mrb[3].mxu1  ;;  %v1096_v17 = vmul.f32 %v1327_v10, %v1081_v11 }
 0x337   : > { %v1076_v18 = vadd.f32 %v1318_v7, %v1075_v16  ;;  %v1094_v19 = vmul.f32 %v1327_v10, %v1073_v13 }
 0x338   : > { %1102 = vadd.xlane.f32.xlu1 %v1096_v17  ;;  %v1097_v20 = vmul.f32 %v1327_v10, %v1084_v15 }
 0x339   : > { %1098 = vadd.xlane.f32.xlu0 %v1094_v19  ;;  %v1095_v21 = vmul.f32 %v1327_v10, %v1076_v18 }
 0x33c   : > { %1104 = vadd.xlane.f32.xlu1 %v1097_v20 }
 0x33d   : > { %1100 = vadd.xlane.f32.xlu0 %v1095_v21 }
 0x3c5   : > { %v1103_v22 = vpop.xlane.xlu1 %1102 }
 0x3c6   : > { %v1108_v23 = vmul.f32 0.03125, %v1103_v22  ;;  %v1099_v24 = vpop.xlane.xlu0 %1098 }
 0x3c7   : > { %v1106_v25 = vmul.f32 0.03125, %v1099_v24 }
 0x3c8   : > { %v1112_v26 = vsub.f32 %v1081_v11, %v1108_v23 }
 0x3c9   : > { %v1110_v27 = vsub.f32 %v1073_v13, %v1106_v25  ;;  %v1105_v28 = vpop.xlane.xlu1 %1104 }
 0x3ca   : > { %v1109_v29 = vmul.f32 0.03125, %v1105_v28  ;;  %v1101_v30 = vpop.xlane.xlu0 %1100  ;;  %v1116_v38 = vmul.f32 %v1327_v10, %v1112_v26 }
 0x3cb   : > { %v1107_v31 = vmul.f32 0.03125, %v1101_v30  ;;  %v1114_v32 = vmul.f32 %v1327_v10, %v1110_v27 }
 0x3cc   : > { %v1113_v33 = vsub.f32 %v1084_v15, %v1109_v29  ;;  %v1120_v40 = vmul.f32 %v1116_v38, %v1116_v38 }
 0x3cd   : > { %v1111_v34 = vsub.f32 %v1076_v18, %v1107_v31  ;;  %v1118_v35 = vmul.f32 %v1114_v32, %v1114_v32 }
 0x3ce   : > { %v1117_v42 = vmul.f32 %v1327_v10, %v1113_v33 }
 0x3cf   : > { %1122 = vadd.xlane.f32.xlu0 %v1118_v35  ;;  %v1115_v39 = vmul.f32 %v1327_v10, %v1111_v34 }
 0x3d0   : > { %v1121_v43 = vmul.f32 %v1117_v42, %v1117_v42 }
 0x3d1   : > { %v1119_v41 = vmul.f32 %v1115_v39, %v1115_v39 }
 0x3d3   : > { %1126 = vadd.xlane.f32.xlu0 %v1120_v40  ;;  %1124 = vadd.xlane.f32.xlu1 %v1119_v41 }
 0x3d7   : > { %1128 = vadd.xlane.f32.xlu1 %v1121_v43 }
 0x45c   : > { %v1123_v44 = vpop.xlane.xlu0 %1122 }
 0x45d   : > { %v1130_v45 = vmul.f32 0.03125, %v1123_v44 }
 0x45f   : > { %v1134_v46 = vadd.f32 1e-05, %v1130_v45 }
 0x460   : > { %v1125_v47 = vpop.xlane.xlu1 %1124  ;;  %v1127_v48 = vpop.xlane.xlu0 %1126 }
 0x461   : > { %1539 = vrsqrt.f32 %v1134_v46  ;;  %v1131_v51 = vmul.f32 0.03125, %v1125_v47  ;;  %v1132_v52 = vmul.f32 0.03125, %v1127_v48 }
 0x463   : > { %v1135_v53 = vadd.f32 1e-05, %v1131_v51  ;;  %v1136_v54 = vadd.f32 1e-05, %v1132_v52 }
 0x464   : > { %v1129_v55 = vpop.xlane.xlu1 %1128 }
 0x465   : > { %1541 = vrsqrt.f32 %v1135_v53  ;;  %v1133_v56 = vmul.f32 0.03125, %v1129_v55 }
 0x466   : > { %1543 = vrsqrt.f32 %v1136_v54 }
 0x467   : > { %v1137_v57 = vadd.f32 1e-05, %v1133_v56 }
 0x469   : > { %1545 = vrsqrt.f32 %v1137_v57 }
 0x46b   : > { %v1540_v58 = vpop.eup %1539 }
 0x46c   : > { %v1142_v60 = vmul.f32 %v1540_v58, %v1114_v32 }
 0x46e   : > { %v1152_v62 = vmul.f32 %v1328_v59, %v1142_v60 }
 0x46f   : > { %v1542_v63 = vpop.eup %1541 }
 0x470   : > { %v1544_v0 = vpop.eup %1543  ;;  %v1162_v1 = vadd.f32 %v1329_v61, %v1152_v62  ;;  %v1143_v2 = vmul.f32 %v1542_v63, %v1115_v39 }
 0x471   : > { %v1144_v3 = vmul.f32 %v1544_v0, %v1116_v38 }
 0x472   : > { %v1166_v4 = vadd.f32 %v1162_v1, %v1852_v36  ;;  %v1153_v5 = vmul.f32 %v1328_v59, %v1143_v2 }
 0x473   : > { %v1546_v6 = vpop.eup %1545  ;;  %v1154_v7 = vmul.f32 %v1328_v59, %v1144_v3 }
 0x474   : > { %1170 = vst [vmem:[%s1734_s27] sm:$0xff] %v1166_v4  ;;  %v1163_v8 = vadd.f32 %v1329_v61, %v1153_v5  ;;  %v1145_v9 = vmul.f32 %v1546_v6, %v1117_v42 }
 0x475   : > { %v1164_v10 = vadd.f32 %v1329_v61, %v1154_v7 }
 0x476   : > { %v1167_v11 = vadd.f32 %v1163_v8, %v1855_v37  ;;  %v1155_v12 = vmul.f32 %v1328_v59, %v1145_v9 }
 0x477   : > { %v1168_v13 = vadd.f32 %v1164_v10, %v1887_v49 }
 0x478   : > { %1171 = vst [vmem:[%s1734_s27 + $0x8] sm:$0xff] %v1167_v11  ;;  %v1165_v14 = vadd.f32 %v1329_v61, %v1155_v12 }
 0x479   : > { %1172 = vst [vmem:[%s1734_s27 + $0x10] sm:$0xff] %v1168_v13 }
 0x47a   : > { %v1169_v15 = vadd.f32 %v1165_v14, %v1890_v50 }
 0x47c   : > { %1173 = vst [vmem:[%s1734_s27 + $0x18] sm:$0xff] %v1169_v15 }
 0x47d PF: > { %s32_s15 = sadd.s32 1, %s1611_s15   ;;  %s1956_s30 = sld [smem:[#allocation7_spill]] }
 0x47e   : > { %p29_p11 = scmp.ge.s32.totalorder %s32_s15, 11   ;;  %s1957_s17 = sld [smem:[#allocation8_spill]] }
 0x47f   : > { %s1958_s14 = sld [smem:[#allocation9_spill]]  ;;  %s1959_s1 = smov %s1603_s13 }
 0x480   :  { %31 = sbr.rel (!%p29_p11) target bundleno = 29 (0x1d), region = 108 }
 0x484   : > { %s1960_s13 = smov %s1957_s17 }

// kernel: graph_nets_conv.2
= control target key start
LH: loop header
LB: loop body
LE: loop exit
PB: predicated region body
PF: predicated region fallthrough
CT: control target
= control target key end

     0   :  { %s3082_s17 = smov 0   ;;  %s3920_s0 = inlined_call_operand.vmem [shape: bf16[768,128], index: 0, kind: input, shape index: {}]   ;;  %s3921_s1 = inlined_call_operand.vmem [shape: bf16[768,128], index: 1, kind: input, shape index: {}]   ;;  %s3922_s2 = inlined_call_operand.vmem [shape: f32[768,128], index: 2, kind: input, shape index: {}]   ;;  %s3923_s3 = inlined_call_operand.vmem [shape: bf16[128,128], index: 3, kind: input, shape index: {}]   ;;  %s3924_s4 = inlined_call_operand.vmem [shape: bf16[128,128], index: 4, kind: input, shape index: {}]   ;;  %s3925_s5 = inlined_call_operand.vmem [shape: bf16[128,128], index: 5, kind: input, shape index: {}]   ;;  %s3926_s6 = inlined_call_operand.vmem [shape: f32[1,128], index: 6, kind: input, shape index: {}]   ;;  %s3927_s7 = inlined_call_operand.vmem [shape: bf16[128,128], index: 7, kind: input, shape index: {}]   ;;  %s3928_s8 = inlined_call_operand.vmem [shape: f32[1,128], index: 8, kind: input, shape index: {}]   ;;  %s3929_s9 = inlined_call_operand.vmem [shape: f32[1,128], index: 9, kind: input, shape index: {}]   ;;  %s3930_s10 = inlined_call_operand.vmem [shape: f32[1,128], index: 10, kind: input, shape index: {}]   ;;  %s3931_s11 = inlined_call_operand.vmem [shape: f32[768,128], index: 11, kind: output, shape index: {}]  }
   0x1 LB: > { %s2408_s18 = sadd.s32 4294967295, %s3019_s17   ;;  %p2412_p0 = scmp.ge.s32.totalorder %s3019_s17, 1  ;;  %s3019_s17 = sphi %s3082_s17, %s21_s17  }
   0x2   : > { %p360_p1 = scmp.lt.s32.totalorder %s3019_s17, 4 }
   0x4   : > { %p361_p2 = pnand %p2412_p0, %p360_p1 }
   0x5   : > { %v2853_v0 = vld [vmem:[%s3923_s3] sm:$0xff] (!%p361_p2)   ;;  %s2413_s21 = sshll.u32 (!%p361_p2), %s2408_s18, 5  ;;  %v2854_v1 = vld [vmem:[%s3923_s3 + $0x8] sm:$0xff] (!%p361_p2)   ;;  %v2855_v2 = vld [vmem:[%s3923_s3 + $0x10] sm:$0xff] (!%p361_p2)  }
   0x6   : > { %364 = sbr.rel (%p361_p2) target bundleno = 922 (0x39a), region = 64  ;;  %p411_p3 = scmp.lt.s32.totalorder (!%p361_p2), %s2413_s21, 95  ;;  %2636 = vmatprep.subr.bf16.mxu0 (!%p361_p2), %v2853_v0  ;;  %v2856_v3 = vld [vmem:[%s3923_s3 + $0x18] sm:$0xff] (!%p361_p2)   ;;  %v2857_v5 = vld [vmem:[%s3923_s3 + $0x20] sm:$0xff] (!%p361_p2)   ;;  %v2858_v6 = vld [vmem:[%s3923_s3 + $0x28] sm:$0xff] (!%p361_p2)  }
   0x7   : > { %2637 = vmatpush3.bf16.msra.mxu0 (!%p361_p2), %v2853_v0  ;;  %v2859_v7 = vld [vmem:[%s3923_s3 + $0x30] sm:$0xff] (!%p361_p2)   ;;  %v2873_v8 = vld [vmem:[%s3924_s4] sm:$0xff] (!%p361_p2)   ;;  %v2860_v9 = vld [vmem:[%s3923_s3 + $0x38] sm:$0xff] (!%p361_p2)  }
   0x8   : > { %2638 = vmatprep.subr.bf16.mxu0 (!%p361_p2), %v2854_v1  ;;  %2588 = vmatprep.subr.bf16.mxu1 (!%p361_p2), %v2873_v8  ;;  %v2877_v10 = vld [vmem:[%s3924_s4 + $0x8] sm:$0xff] (!%p361_p2)   ;;  %v2878_v11 = vld [vmem:[%s3924_s4 + $0x10] sm:$0xff] (!%p361_p2)   ;;  %v2863_v12 = vld [vmem:[%s3925_s5] sm:$0xff] (!%p361_p2)  }
   0x9   : > { %2589 = vmatpush3.bf16.msra.mxu1 (!%p361_p2), %v2873_v8  ;;  %v2882_v13 = vld [vmem:[%s3924_s4 + $0x18] sm:$0xff] (!%p361_p2)   ;;  %v2866_v16 = vld [vmem:[%s3925_s5 + $0x8] sm:$0xff] (!%p361_p2)   ;;  %v2883_v17 = vld [vmem:[%s3924_s4 + $0x20] sm:$0xff] (!%p361_p2)  }
   0xa   : > { %2590 = vmatprep.subr.bf16.mxu1 (!%p361_p2), %v2877_v10  ;;  %v2869_v19 = vld [vmem:[%s3925_s5 + $0x10] sm:$0xff] (!%p361_p2)   ;;  %v2887_v20 = vld [vmem:[%s3924_s4 + $0x28] sm:$0xff] (!%p361_p2)   ;;  %v2872_v22 = vld [vmem:[%s3925_s5 + $0x18] sm:$0xff] (!%p361_p2)  }
   0xb   : > { %2639 = vmatpush3.bf16.msra.mxu0 (!%p361_p2), %v2854_v1  ;;  %v2888_v24 = vld [vmem:[%s3924_s4 + $0x30] sm:$0xff] (!%p361_p2)   ;;  %v2876_v25 = vld [vmem:[%s3925_s5 + $0x20] sm:$0xff] (!%p361_p2)   ;;  %v2892_v26 = vld [vmem:[%s3924_s4 + $0x38] sm:$0xff] (!%p361_p2)  }
   0xc   : > { %2640 = vmatprep.subr.bf16.mxu0 (!%p361_p2), %v2855_v2  ;;  %v2881_v29 = vld [vmem:[%s3925_s5 + $0x28] sm:$0xff] (!%p361_p2)   ;;  %v2886_v31 = vld [vmem:[%s3925_s5 + $0x30] sm:$0xff] (!%p361_p2)   ;;  %v2891_v35 = vld [vmem:[%s3925_s5 + $0x38] sm:$0xff] (!%p361_p2)  }
   0xd   : > { %s3933_s21 = smov (!%p411_p3, %s2413_s21), 95  ;;  %2591 = vmatpush3.bf16.msra.mxu1 %v2877_v10  ;;  %v2909_v42 = vld [vmem:[%s3927_s7] sm:$0xff]   ;;  %v2910_v43 = vld [vmem:[%s3927_s7 + $0x8] sm:$0xff]   ;;  %v2911_v46 = vld [vmem:[%s3927_s7 + $0x10] sm:$0xff]  }
   0xe   : > { %s2414_s26 = sshll.u32 %s3933_s21, 2  ;;  %2592 = vmatprep.subr.bf16.mxu1 %v2878_v11  ;;  %v2912_v48 = vld [vmem:[%s3927_s7 + $0x18] sm:$0xff]   ;;  %s2418_s19 = sshll.u32 %s3933_s21, 3  ;;  %v2913_v52 = vld [vmem:[%s3927_s7 + $0x20] sm:$0xff]   ;;  %v2914_v54 = vld [vmem:[%s3927_s7 + $0x28] sm:$0xff]  }
   0xf   : > { %s3107_s29 = scalar_lea.vmem %s3920_s0, %s2414_s26  ;;  %2641 = vmatpush3.bf16.msra.mxu0 %v2855_v2  ;;  %s3160_s30 = scalar_lea.vmem %s3921_s1, %s2414_s26  ;;  %v2915_v60 = vld [vmem:[%s3927_s7 + $0x30] sm:$0xff]  }
  0x10   : > { %v2861_v4 = vld [vmem:[%s3107_s29] sm:$0xff]   ;;  %2642 = vmatprep.subr.bf16.mxu0 %v2856_v3  ;;  %v2862_v14 = vld [vmem:[%s3107_s29 + $0x8] sm:$0xff]   ;;  %v2864_v15 = vld [vmem:[%s3107_s29 + $0x10] sm:$0xff]   ;;  %s3224_s25 = scalar_lea.vmem %s3922_s2, %s2418_s19  ;;  %s3759_s28 = scalar_lea.vmem %s3931_s11, %s2418_s19 }
  0x11   : > { %2652 = vmatprep.mubr.bf16.mxu0 %v2861_v4  ;;  %2593 = vmatpush3.bf16.msra.mxu1 %v2878_v11  ;;  %v2865_v18 = vld [vmem:[%s3107_s29 + $0x18] sm:$0xff]   ;;  %v2867_v21 = vld [vmem:[%s3107_s29 + $0x20] sm:$0xff]   ;;  %v2868_v27 = vld [vmem:[%s3107_s29 + $0x28] sm:$0xff]  }
  0x12   : > { %2594 = vmatprep.subr.bf16.mxu1 %v2882_v13  ;;  %v2893_v23 = vld [vmem:[%s3160_s30] sm:$0xff]   ;;  %v2870_v28 = vld [vmem:[%s3107_s29 + $0x30] sm:$0xff]   ;;  %v2894_v30 = vld [vmem:[%s3160_s30 + $0x8] sm:$0xff]  }
  0x13   : > { %2643 = vmatpush3.bf16.msra.mxu0 %v2856_v3  ;;  %2604 = vmatprep.mubr.bf16.mxu1 %v2893_v23  ;;  %v2895_v32 = vld [vmem:[%s3160_s30 + $0x10] sm:$0xff]   ;;  %v2871_v33 = vld [vmem:[%s3107_s29 + $0x38] sm:$0xff]   ;;  %v2874_v34 = vld [vmem:[%s3107_s29 + $0x40] sm:$0xff]  }
  0x14   : > { %2644 = vmatprep.subr.bf16.mxu0 %v2857_v5  ;;  %v2896_v36 = vld [vmem:[%s3160_s30 + $0x18] sm:$0xff]   ;;  %v2897_v37 = vld [vmem:[%s3160_s30 + $0x20] sm:$0xff]   ;;  %v2875_v38 = vld [vmem:[%s3107_s29 + $0x48] sm:$0xff]  }
  0x15   : > { %2595 = vmatpush3.bf16.msra.mxu1 %v2882_v13  ;;  %v2879_v39 = vld [vmem:[%s3107_s29 + $0x50] sm:$0xff]   ;;  %v2898_v40 = vld [vmem:[%s3160_s30 + $0x28] sm:$0xff]   ;;  %v2880_v44 = vld [vmem:[%s3107_s29 + $0x58] sm:$0xff]  }
  0x16   : > { %2596 = vmatprep.subr.bf16.mxu1 %v2883_v17  ;;  %v2899_v41 = vld [vmem:[%s3160_s30 + $0x30] sm:$0xff]   ;;  %v2884_v45 = vld [vmem:[%s3107_s29 + $0x60] sm:$0xff]   ;;  %v2900_v47 = vld [vmem:[%s3160_s30 + $0x38] sm:$0xff]  }
  0x17   : > { %2645 = vmatpush3.bf16.msra.mxu0 %v2857_v5  ;;  %v2901_v49 = vld [vmem:[%s3160_s30 + $0x40] sm:$0xff]   ;;  %v2885_v50 = vld [vmem:[%s3107_s29 + $0x68] sm:$0xff]   ;;  %v2889_v51 = vld [vmem:[%s3107_s29 + $0x70] sm:$0xff]  }
  0x18   : > { %2646 = vmatprep.subr.bf16.mxu0 %v2858_v6  ;;  %v2902_v53 = vld [vmem:[%s3160_s30 + $0x48] sm:$0xff]   ;;  %v1141_v55 = vld [vmem:[%s3224_s25] sm:$0xff]  ;;  %v2903_v57 = vld [vmem:[%s3160_s30 + $0x50] sm:$0xff]  }
  0x19   : > { %2597 = vmatpush3.bf16.msra.mxu1 %v2883_v17  ;;  %v1142_v56 = vld [vmem:[%s3224_s25 + $0x8] sm:$0xff]  ;;  %v2890_v58 = vld [vmem:[%s3107_s29 + $0x78] sm:$0xff]   ;;  %v1143_v61 = vld [vmem:[%s3224_s25 + $0x10] sm:$0xff] }
  0x1a   : > { %2598 = vmatprep.subr.bf16.mxu1 %v2887_v20  ;;  %v1173_v59 = vpack.c.bf16 %v1142_v56, %v1141_v55  ;;  %v1144_v62 = vld [vmem:[%s3224_s25 + $0x18] sm:$0xff]  ;;  %v1145_v0 = vld [vmem:[%s3224_s25 + $0x20] sm:$0xff]  ;;  %v1146_v1 = vld [vmem:[%s3224_s25 + $0x28] sm:$0xff] }
  0x1b   : > { %2647 = vmatpush3.bf16.msra.mxu0 %v2858_v6  ;;  %v2904_v63 = vld [vmem:[%s3160_s30 + $0x58] sm:$0xff]   ;;  %v2905_v2 = vld [vmem:[%s3160_s30 + $0x60] sm:$0xff]   ;;  %v1174_v3 = vpack.c.bf16 %v1144_v62, %v1143_v61  ;;  %v1175_v4 = vpack.c.bf16 %v1146_v1, %v1145_v0  ;;  %v1147_v5 = vld [vmem:[%s3224_s25 + $0x30] sm:$0xff] }
  0x1c   : > { %2648 = vmatprep.subr.bf16.mxu0 %v2859_v7  ;;  %v1148_v6 = vld [vmem:[%s3224_s25 + $0x38] sm:$0xff]  ;;  %v1149_v8 = vld [vmem:[%s3224_s25 + $0x40] sm:$0xff]  ;;  %v2907_v10 = vld [vmem:[%s3160_s30 + $0x70] sm:$0xff]  }
  0x1d   : > { %2599 = vmatpush3.bf16.msra.mxu1 %v2887_v20  ;;  %v1176_v11 = vpack.c.bf16 %v1148_v6, %v1147_v5  ;;  %v1151_v13 = vld [vmem:[%s3224_s25 + $0x50] sm:$0xff]  ;;  %v1154_v17 = vld [vmem:[%s3224_s25 + $0x68] sm:$0xff] }
  0x1e   : > { %2600 = vmatprep.subr.bf16.mxu1 %v2888_v24  ;;  %v1155_v20 = vld [vmem:[%s3224_s25 + $0x70] sm:$0xff]  ;;  %v1158_v23 = vld [vmem:[%s3224_s25 + $0x88] sm:$0xff] }
  0x1f   : > { %2649 = vmatpush3.bf16.msra.mxu0 %v2859_v7  ;;  %v2906_v7 = vld [vmem:[%s3160_s30 + $0x68] sm:$0xff]  }
  0x20   : > { %2650 = vmatprep.subr.bf16.mxu0 %v2860_v9 }
  0x21   : > { %2601 = vmatpush3.bf16.msra.mxu1 %v2888_v24 }
  0x22   : > { %2602 = vmatprep.subr.bf16.mxu1 %v2892_v26 }
  0x23   : > { %2651 = vmatpush3.bf16.msra.mxu0 %v2860_v9  ;;  %v1150_v9 = vld [vmem:[%s3224_s25 + $0x48] sm:$0xff] }
  0x24   : > { %2684 = vmatprep.subr.bf16.mxu0 %v2863_v12 }
  0x25   : > { %2603 = vmatpush3.bf16.msra.mxu1 %v2892_v26  ;;  %v1159_v26 = vld [vmem:[%s3224_s25 + $0x90] sm:$0xff] }
  0x26   : > { %2653 = vmatmul.mubr.bf16.vlgmr.msra.gmra.mrb[0].mxu0 %v2862_v14  ;;  %2732 = vmatprep.subr.bf16.mxu1 %v2909_v42  ;;  %v1152_v14 = vld [vmem:[%s3224_s25 + $0x58] sm:$0xff] }
  0x27   : > { %2685 = vmatpush3.bf16.msra.mxu0 %v2863_v12  ;;  %2656 = vmatprep.mubr.bf16.mxu0 %v2864_v15  ;;  %v1177_v12 = vpack.c.bf16 %v1150_v9, %v1149_v8  ;;  %v2908_v15 = vld [vmem:[%s3160_s30 + $0x78] sm:$0xff]   ;;  %v3306_v8 = vld [vmem:[%s3926_s6] ss:$0 sm:$0xff] }
  0x28   : > { %2686 = vmatprep.subr.bf16.mxu0 %v2866_v16  ;;  %2605 = vmatmul.mubr.bf16.vlgmr.msra.gmra.mrb[0].mxu1 %v2894_v30 }
  0x29   : > { %2608 = vmatprep.mubr.bf16.mxu1 %v2895_v32  ;;  %2733 = vmatpush3.bf16.msra.mxu1 %v2909_v42  ;;  %v1163_v32 = vld [vmem:[%s3224_s25 + $0xb0] sm:$0xff] }
  0x2a   : > { %2734 = vmatprep.subr.bf16.mxu1 %v2910_v43 }
  0x2b   : > { %2687 = vmatpush3.bf16.msra.mxu0 %v2866_v16  ;;  %v1153_v16 = vld [vmem:[%s3224_s25 + $0x60] sm:$0xff] }
  0x2c   : > { %2688 = vmatprep.subr.bf16.mxu0 %v2869_v19 }
  0x2d   : > { %2735 = vmatpush3.bf16.msra.mxu1 %v2910_v43 }
  0x2e   : > { %2657 = vmatmul.mubr.bf16.gmra.mrb[4].mxu0 %v2865_v18  ;;  %2736 = vmatprep.subr.bf16.mxu1 %v2911_v46  ;;  %v1178_v18 = vpack.c.bf16 %v1152_v14, %v1151_v13 }
  0x2f   : > { %2660 = vmatprep.mubr.bf16.mxu0 %v2867_v21  ;;  %2689 = vmatpush3.bf16.msra.mxu0 %v2869_v19  ;;  %v1179_v19 = vpack.c.bf16 %v1154_v17, %v1153_v16  ;;  %v1156_v21 = vld [vmem:[%s3224_s25 + $0x78] sm:$0xff] }
  0x30   : > { %2690 = vmatprep.subr.bf16.mxu0 %v2872_v22  ;;  %2609 = vmatmul.mubr.bf16.gmra.mrb[4].mxu1 %v2896_v36  ;;  %v1180_v24 = vpack.c.bf16 %v1156_v21, %v1155_v20 }
  0x31   : > { %2612 = vmatprep.mubr.bf16.mxu1 %v2897_v37  ;;  %2737 = vmatpush3.bf16.msra.mxu1 %v2911_v46 }
  0x32   : > { %2738 = vmatprep.subr.bf16.mxu1 %v2912_v48 }
  0x33   : > { %2691 = vmatpush3.bf16.msra.mxu0 %v2872_v22  ;;  %v1157_v22 = vld [vmem:[%s3224_s25 + $0x80] sm:$0xff] }
  0x34   : > { %2692 = vmatprep.subr.bf16.mxu0 %v2876_v25 }
  0x35   : > { %2739 = vmatpush3.bf16.msra.mxu1 %v2912_v48 }
  0x36   : > { %2661 = vmatmul.mubr.bf16.gmra.mrb[8].mxu0 %v2868_v27  ;;  %2740 = vmatprep.subr.bf16.mxu1 %v2913_v52  ;;  %v1160_v27 = vld [vmem:[%s3224_s25 + $0x98] sm:$0xff] }
  0x37   : > { %2664 = vmatprep.mubr.bf16.mxu0 %v2870_v28  ;;  %2693 = vmatpush3.bf16.msra.mxu0 %v2876_v25  ;;  %v1181_v25 = vpack.c.bf16 %v1158_v23, %v1157_v22  ;;  %v1161_v28 = vld [vmem:[%s3224_s25 + $0xa0] sm:$0xff]  ;;  %v1182_v30 = vpack.c.bf16 %v1160_v27, %v1159_v26 }
  0x38   : > { %2694 = vmatprep.subr.bf16.mxu0 %v2881_v29  ;;  %2613 = vmatmul.mubr.bf16.gmra.mrb[8].mxu1 %v2898_v40  ;;  %v1169_v40 = vld [vmem:[%s3224_s25 + $0xe0] sm:$0xff] }
  0x39   : > { %2616 = vmatprep.mubr.bf16.mxu1 %v2899_v41  ;;  %2741 = vmatpush3.bf16.msra.mxu1 %v2913_v52  ;;  %v1170_v41 = vld [vmem:[%s3224_s25 + $0xe8] sm:$0xff] }
  0x3a   : > { %2742 = vmatprep.subr.bf16.mxu1 %v2914_v54  ;;  %v1187_v43 = vpack.c.bf16 %v1170_v41, %v1169_v40 }
  0x3b   : > { %2695 = vmatpush3.bf16.msra.mxu0 %v2881_v29  ;;  %v1162_v29 = vld [vmem:[%s3224_s25 + $0xa8] sm:$0xff] }
  0x3c   : > { %2696 = vmatprep.subr.bf16.mxu0 %v2886_v31 }
  0x3d   : > { %2743 = vmatpush3.bf16.msra.mxu1 %v2914_v54 }
  0x3e   : > { %2665 = vmatmul.mubr.bf16.gmra.mrb[12].mxu0 %v2871_v33  ;;  %2744 = vmatprep.subr.bf16.mxu1 %v2915_v60  ;;  %v1164_v33 = vld [vmem:[%s3224_s25 + $0xb8] sm:$0xff] }
  0x3f   : > { %2668 = vmatprep.mubr.bf16.mxu0 %v2874_v34  ;;  %2697 = vmatpush3.bf16.msra.mxu0 %v2886_v31  ;;  %v1183_v31 = vpack.c.bf16 %v1162_v29, %v1161_v28  ;;  %v1165_v34 = vld [vmem:[%s3224_s25 + $0xc0] sm:$0xff]  ;;  %v1184_v36 = vpack.c.bf16 %v1164_v33, %v1163_v32 }
  0x40   : > { %2698 = vmatprep.subr.bf16.mxu0 %v2891_v35  ;;  %2617 = vmatmul.mubr.bf16.gmra.mrb[12].mxu1 %v2900_v47  ;;  %v2916_v47 = vld [vmem:[%s3927_s7 + $0x38] sm:$0xff]  }
  0x41   : > { %2620 = vmatprep.mubr.bf16.mxu1 %v2901_v49  ;;  %2745 = vmatpush3.bf16.msra.mxu1 %v2915_v60 }
  0x42   : > { %2746 = vmatprep.subr.bf16.mxu1 %v2916_v47 }
  0x43   : > { %2699 = vmatpush3.bf16.msra.mxu0 %v2891_v35  ;;  %v1166_v35 = vld [vmem:[%s3224_s25 + $0xc8] sm:$0xff] }
  0x44   : > { %v1185_v37 = vpack.c.bf16 %v1166_v35, %v1165_v34 }
  0x45   : > { %2747 = vmatpush3.bf16.msra.mxu1 %v2916_v47 }
  0x46   : > { %2669 = vmatmul.mubr.bf16.gmra.mrb[16].mxu0 %v2875_v38  ;;  %v1167_v38 = vld [vmem:[%s3224_s25 + $0xd0] sm:$0xff] }
  0x47   : > { %2672 = vmatprep.mubr.bf16.mxu0 %v2879_v39  ;;  %v1168_v39 = vld [vmem:[%s3224_s25 + $0xd8] sm:$0xff] }
  0x48   : > { %2621 = vmatmul.mubr.bf16.gmra.mrb[16].mxu1 %v2902_v53  ;;  %v1186_v42 = vpack.c.bf16 %v1168_v39, %v1167_v38 }
  0x49   : > { %2624 = vmatprep.mubr.bf16.mxu1 %v2903_v57 }
  0x4e   : > { %2673 = vmatmul.mubr.bf16.gmra.mrb[20].mxu0 %v2880_v44  ;;  %v1171_v44 = vld [vmem:[%s3224_s25 + $0xf0] sm:$0xff] }
  0x4f   : > { %2676 = vmatprep.mubr.bf16.mxu0 %v2884_v45  ;;  %v1172_v45 = vld [vmem:[%s3224_s25 + $0xf8] sm:$0xff] }
  0x50   : > { %2625 = vmatmul.mubr.bf16.gmra.mrb[20].mxu1 %v2904_v63  ;;  %v1188_v46 = vpack.c.bf16 %v1172_v45, %v1171_v44 }
  0x51   : > { %2628 = vmatprep.mubr.bf16.mxu1 %v2905_v2 }
  0x56   : > { %2677 = vmatmul.mubr.bf16.gmra.mrb[24].mxu0 %v2885_v50 }
  0x57   : > { %2680 = vmatprep.mubr.bf16.mxu0 %v2889_v51 }
  0x58   : > { %2629 = vmatmul.mubr.bf16.gmra.mrb[24].mxu1 %v2906_v7 }
  0x59   : > { %2632 = vmatprep.mubr.bf16.mxu1 %v2907_v10 }
  0x5e   : > { %2681 = vmatmul.mubr.bf16.gmra.mrb[28].mxu0 %v2890_v58 }
  0x5f   : > { %2700 = vmatprep.mubr.bf16.mxu0 %v1173_v59 }
  0x60   : > { %2633 = vmatmul.mubr.bf16.gmra.mrb[28].mxu1 %v2908_v15 }
  0x66   : > { %2701 = vmatmul.mubr.bf16.vlgmr.msra.gmra.mrb[0].mxu0 %v1174_v3 }
  0x67   : > { %2704 = vmatprep.mubr.bf16.mxu0 %v1175_v4 }
  0x6e   : > { %2705 = vmatmul.mubr.bf16.gmra.mrb[4].mxu0 %v1176_v11 }
  0x6f   : > { %2708 = vmatprep.mubr.bf16.mxu0 %v1177_v12 }
  0x76   : > { %2709 = vmatmul.mubr.bf16.gmra.mrb[8].mxu0 %v1178_v18 }
  0x77   : > { %2712 = vmatprep.mubr.bf16.mxu0 %v1179_v19 }
  0x7e   : > { %2713 = vmatmul.mubr.bf16.gmra.mrb[12].mxu0 %v1180_v24 }
  0x7f   : > { %2716 = vmatprep.mubr.bf16.mxu0 %v1181_v25 }
  0x86   : > { %2717 = vmatmul.mubr.bf16.gmra.mrb[16].mxu0 %v1182_v30 }
  0x87   : > { %2720 = vmatprep.mubr.bf16.mxu0 %v1183_v31 }
  0x8e   : > { %2721 = vmatmul.mubr.bf16.gmra.mrb[20].mxu0 %v1184_v36 }
  0x8f   : > { %2724 = vmatprep.mubr.bf16.mxu0 %v1185_v37 }
  0x96   : > { %2725 = vmatmul.mubr.bf16.gmra.mrb[24].mxu0 %v1186_v42 }
  0x97   : > { %2728 = vmatprep.mubr.bf16.mxu0 %v1187_v43 }
  0x9e   : > { %2729 = vmatmul.mubr.bf16.gmra.mrb[28].mxu0 %v1188_v46 }
  0xfb   : > { %v2606_v48 = vpop.f32.mrb[0].mxu1 }
  0xfc   : > { %v709_v49 = vpop.f32.mrb[1].mxu1 }
  0xfd   : > { %v2607_v50 = vpop.f32.mrb[2].mxu1 }
  0xfe   : > { %v712_v51 = vpop.f32.mrb[3].mxu1 }
 0x103   : > { %v2610_v52 = vpop.f32.mrb[4].mxu1 }
 0x104   : > { %v725_v53 = vpop.f32.mrb[5].mxu1 }
 0x105   : > { %v2611_v54 = vpop.f32.mrb[6].mxu1 }
 0x106   : > { %v728_v55 = vpop.f32.mrb[7].mxu1 }
 0x10b   : > { %v2614_v56 = vpop.f32.mrb[8].mxu1 }
 0x10c   : > { %v3275_v57 = vpop.f32.mrb[9].mxu1 }
 0x10d   : > { %v3277_v58 = vpop.f32.mrb[10].mxu1 }
 0x10e   : > { %v3279_v59 = vpop.f32.mrb[11].mxu1 }
 0x113   : > { %v3281_v60 = vpop.f32.mrb[12].mxu1 }
 0x114   : > { %v3283_v61 = vpop.f32.mrb[13].mxu1 }
 0x115   : > { %v3285_v62 = vpop.f32.mrb[14].mxu1 }
 0x116   : > { %v3287_v63 = vpop.f32.mrb[15].mxu1 }
 0x11b   : > { %v3289_v0 = vpop.f32.mrb[16].mxu1 }
 0x11c   : > { %v3291_v1 = vpop.f32.mrb[17].mxu1 }
 0x11d   : > { %v3293_v2 = vpop.f32.mrb[18].mxu1 }
 0x11e   : > { %v3295_v3 = vpop.f32.mrb[19].mxu1 }
 0x123   : > { %v3297_v4 = vpop.f32.mrb[20].mxu1 }
 0x124   : > { %v3299_v5 = vpop.f32.mrb[21].mxu1 }
 0x125   : > { %v3301_v6 = vpop.f32.mrb[22].mxu1 }
 0x126   : > { %v3308_v9 = vpop.f32.mrb[23].mxu1 }
 0x12b   : > { %v3313_v20 = vpop.f32.mrb[24].mxu1 }
 0x12c   : > { %v3316_v22 = vpop.f32.mrb[25].mxu1 }
 0x12d   : > { %v3318_v25 = vpop.f32.mrb[26].mxu1 }
 0x12e   : > { %v3320_v29 = vpop.f32.mrb[27].mxu1 }
 0x133   : > { %v3325_v42 = vpop.f32.mrb[28].mxu1 }
 0x134   : > { %v3328_v44 = vpop.f32.mrb[29].mxu1 }
 0x135   : > { %v3330_v47 = vpop.f32.mrb[30].mxu1 }
 0x139   : > { %v2702_v7 = vpop.f32.mrb[0].mxu0 }
 0x13a   : > { %v2780_v10 = vadd.f32 %v2702_v7, %v2606_v48  ;;  %v1287_v11 = vpop.f32.mrb[1].mxu0 }
 0x13b   : > { %v2781_v12 = vadd.f32 %v1287_v11, %v709_v49  ;;  %v2703_v13 = vpop.f32.mrb[2].mxu0 }
 0x13c   : > { %v1455_v14 = vadd.f32 %v2780_v10, %v3306_v8  ;;  %v2782_v15 = vadd.f32 %v2703_v13, %v2607_v50  ;;  %v1290_v16 = vpop.f32.mrb[3].mxu0 }
 0x13d   : > { %v1453_v17 = vadd.f32 %v2781_v12, %v3306_v8  ;;  %v2783_v18 = vadd.f32 %v1290_v16, %v712_v51  ;;  %v3332_v51 = vpop.f32.mrb[31].mxu1 }
 0x13e   : > { %v1456_v19 = vadd.f32 %v2782_v15, %v3306_v8  ;;  %v1487_v23 = vmax.f32 %v1455_v14, 0.0 }
 0x13f   : > { %v1454_v21 = vadd.f32 %v2783_v18, %v3306_v8  ;;  %v1485_v26 = vmax.f32 %v1453_v17, 0.0 }
 0x140   : > { %v1488_v24 = vmax.f32 %v1456_v19, 0.0 }
 0x141   : > { %v1486_v27 = vmax.f32 %v1454_v21, 0.0  ;;  %v2706_v28 = vpop.f32.mrb[4].mxu0 }
 0x142   : > { %v1518_v30 = vpack.c.bf16 %v1488_v24, %v1487_v23  ;;  %v2784_v31 = vadd.f32 %v2706_v28, %v2610_v52  ;;  %v1303_v32 = vpop.f32.mrb[5].mxu0 }
 0x143   : > { %v2785_v33 = vadd.f32 %v1303_v32, %v725_v53  ;;  %v2707_v34 = vpop.f32.mrb[6].mxu0  ;;  %v1517_v35 = vpack.c.bf16 %v1486_v27, %v1485_v26 }
 0x144   : > { %v1459_v36 = vadd.f32 %v2784_v31, %v3306_v8  ;;  %v2786_v37 = vadd.f32 %v2707_v34, %v2611_v54  ;;  %v1306_v38 = vpop.f32.mrb[7].mxu0 }
 0x145   : > { %v1457_v39 = vadd.f32 %v2785_v33, %v3306_v8  ;;  %v2787_v40 = vadd.f32 %v1306_v38, %v728_v55  ;;  %2748 = vmatprep.mubr.bf16.mxu1 %v1517_v35 }
 0x146   : > { %v1460_v41 = vadd.f32 %v2786_v37, %v3306_v8  ;;  %2749 = vmatmul.mubr.bf16.vlgmr.msra.gmra.mrb[32].mxu1 %v1518_v30  ;;  %v1491_v45 = vmax.f32 %v1459_v36, 0.0 }
 0x147   : > { %v1458_v43 = vadd.f32 %v2787_v40, %v3306_v8  ;;  %v1489_v48 = vmax.f32 %v1457_v39, 0.0 }
 0x148   : > { %v1492_v46 = vmax.f32 %v1460_v41, 0.0 }
 0x149   : > { %v1490_v49 = vmax.f32 %v1458_v43, 0.0  ;;  %v2710_v50 = vpop.f32.mrb[8].mxu0 }
 0x14a   : > { %v2788_v52 = vadd.f32 %v2710_v50, %v2614_v56  ;;  %v1319_v53 = vpop.f32.mrb[9].mxu0  ;;  %v1520_v54 = vpack.c.bf16 %v1492_v46, %v1491_v45 }
 0x14b   : > { %v2789_v55 = vadd.f32 %v1319_v53, %v3275_v57  ;;  %v2711_v7 = vpop.f32.mrb[10].mxu0  ;;  %v1519_v10 = vpack.c.bf16 %v1490_v49, %v1489_v48 }
 0x14c   : > { %v1463_v11 = vadd.f32 %v2788_v52, %v3306_v8  ;;  %v2790_v12 = vadd.f32 %v2711_v7, %v3277_v58  ;;  %v1322_v13 = vpop.f32.mrb[11].mxu0 }
 0x14d   : > { %v1461_v14 = vadd.f32 %v2789_v55, %v3306_v8  ;;  %v2791_v15 = vadd.f32 %v1322_v13, %v3279_v59  ;;  %2752 = vmatprep.mubr.bf16.mxu1 %v1519_v10 }
 0x14e   : > { %v1464_v16 = vadd.f32 %v2790_v12, %v3306_v8  ;;  %2753 = vmatmul.mubr.bf16.gmra.mrb[36].mxu1 %v1520_v54  ;;  %v1495_v17 = vmax.f32 %v1463_v11, 0.0 }
 0x14f   : > { %v1462_v56 = vadd.f32 %v2791_v15, %v3306_v8  ;;  %v1493_v57 = vmax.f32 %v1461_v14, 0.0 }
 0x150   : > { %v1496_v18 = vmax.f32 %v1464_v16, 0.0 }
 0x151   : > { %v1494_v19 = vmax.f32 %v1462_v56, 0.0  ;;  %v2714_v21 = vpop.f32.mrb[12].mxu0 }
 0x152   : > { %v2792_v23 = vadd.f32 %v2714_v21, %v3281_v60  ;;  %v1335_v24 = vpop.f32.mrb[13].mxu0  ;;  %v1522_v58 = vpack.c.bf16 %v1496_v18, %v1495_v17 }
 0x153   : > { %v2793_v26 = vadd.f32 %v1335_v24, %v3283_v61  ;;  %v2715_v27 = vpop.f32.mrb[14].mxu0  ;;  %v1521_v28 = vpack.c.bf16 %v1494_v19, %v1493_v57 }
 0x154   : > { %v1467_v59 = vadd.f32 %v2792_v23, %v3306_v8  ;;  %v2794_v30 = vadd.f32 %v2715_v27, %v3285_v62  ;;  %v1338_v31 = vpop.f32.mrb[15].mxu0 }
 0x155   : > { %v1465_v32 = vadd.f32 %v2793_v26, %v3306_v8  ;;  %v2795_v33 = vadd.f32 %v1338_v31, %v3287_v63  ;;  %2756 = vmatprep.mubr.bf16.mxu1 %v1521_v28 }
 0x156   : > { %v1468_v34 = vadd.f32 %v2794_v30, %v3306_v8  ;;  %2757 = vmatmul.mubr.bf16.gmra.mrb[40].mxu1 %v1522_v58  ;;  %v1499_v35 = vmax.f32 %v1467_v59, 0.0 }
 0x157   : > { %v1466_v60 = vadd.f32 %v2795_v33, %v3306_v8  ;;  %v1497_v61 = vmax.f32 %v1465_v32, 0.0 }
 0x158   : > { %v1500_v36 = vmax.f32 %v1468_v34, 0.0 }
 0x159   : > { %v1498_v37 = vmax.f32 %v1466_v60, 0.0  ;;  %v2718_v38 = vpop.f32.mrb[16].mxu0 }
 0x15a   : > { %v2796_v39 = vadd.f32 %v2718_v38, %v3289_v0  ;;  %v1351_v40 = vpop.f32.mrb[17].mxu0  ;;  %v1524_v62 = vpack.c.bf16 %v1500_v36, %v1499_v35 }
 0x15b   : > { %v2797_v41 = vadd.f32 %v1351_v40, %v3291_v1  ;;  %v2719_v43 = vpop.f32.mrb[18].mxu0  ;;  %v1523_v45 = vpack.c.bf16 %v1498_v37, %v1497_v61 }
 0x15c   : > { %v1471_v63 = vadd.f32 %v2796_v39, %v3306_v8  ;;  %v2798_v46 = vadd.f32 %v2719_v43, %v3293_v2  ;;  %v1354_v48 = vpop.f32.mrb[19].mxu0 }
 0x15d   : > { %v1469_v49 = vadd.f32 %v2797_v41, %v3306_v8  ;;  %v2799_v50 = vadd.f32 %v1354_v48, %v3295_v3  ;;  %2760 = vmatprep.mubr.bf16.mxu1 %v1523_v45 }
 0x15e   : > { %v1472_v52 = vadd.f32 %v2798_v46, %v3306_v8  ;;  %2761 = vmatmul.mubr.bf16.gmra.mrb[44].mxu1 %v1524_v62  ;;  %v1503_v53 = vmax.f32 %v1471_v63, 0.0 }
 0x15f   : > { %v1470_v0 = vadd.f32 %v2799_v50, %v3306_v8  ;;  %v1501_v1 = vmax.f32 %v1469_v49, 0.0 }
 0x160   : > { %v1504_v54 = vmax.f32 %v1472_v52, 0.0 }
 0x161   : > { %v1502_v55 = vmax.f32 %v1470_v0, 0.0  ;;  %v2722_v7 = vpop.f32.mrb[20].mxu0 }
 0x162   : > { %v2800_v10 = vadd.f32 %v2722_v7, %v3297_v4  ;;  %v1367_v11 = vpop.f32.mrb[21].mxu0  ;;  %v1526_v2 = vpack.c.bf16 %v1504_v54, %v1503_v53  ;;  %v3021_v54 = vmov 0.0  }
 0x163   : > { %v2801_v12 = vadd.f32 %v1367_v11, %v3299_v5  ;;  %v2723_v13 = vpop.f32.mrb[22].mxu0  ;;  %v1525_v14 = vpack.c.bf16 %v1502_v55, %v1501_v1 }
 0x164   : > { %v1475_v3 = vadd.f32 %v2800_v10, %v3306_v8  ;;  %v2802_v15 = vadd.f32 %v2723_v13, %v3301_v6  ;;  %v1370_v16 = vpop.f32.mrb[23].mxu0 }
 0x165   : > { %v1473_v56 = vadd.f32 %v2801_v12, %v3306_v8  ;;  %v2803_v17 = vadd.f32 %v1370_v16, %v3308_v9  ;;  %2764 = vmatprep.mubr.bf16.mxu1 %v1525_v14 }
 0x166   : > { %v1476_v18 = vadd.f32 %v2802_v15, %v3306_v8  ;;  %2765 = vmatmul.mubr.bf16.gmra.mrb[48].mxu1 %v1526_v2  ;;  %v1507_v57 = vmax.f32 %v1475_v3, 0.0 }
 0x167   : > { %v1474_v4 = vadd.f32 %v2803_v17, %v3306_v8  ;;  %v1505_v5 = vmax.f32 %v1473_v56, 0.0 }
 0x168   : > { %v1508_v19 = vmax.f32 %v1476_v18, 0.0 }
 0x169   : > { %v1506_v21 = vmax.f32 %v1474_v4, 0.0  ;;  %v2726_v23 = vpop.f32.mrb[24].mxu0 }
 0x16a   : > { %v2804_v24 = vadd.f32 %v2726_v23, %v3313_v20  ;;  %v1383_v58 = vpop.f32.mrb[25].mxu0  ;;  %v1528_v6 = vpack.c.bf16 %v1508_v19, %v1507_v57 }
 0x16b   : > { %v2805_v26 = vadd.f32 %v1383_v58, %v3316_v22  ;;  %v2727_v27 = vpop.f32.mrb[26].mxu0  ;;  %v1527_v28 = vpack.c.bf16 %v1506_v21, %v1505_v5 }
 0x16c   : > { %v1479_v9 = vadd.f32 %v2804_v24, %v3306_v8  ;;  %v2806_v59 = vadd.f32 %v2727_v27, %v3318_v25  ;;  %v1386_v30 = vpop.f32.mrb[27].mxu0 }
 0x16d   : > { %v1477_v31 = vadd.f32 %v2805_v26, %v3306_v8  ;;  %v2807_v32 = vadd.f32 %v1386_v30, %v3320_v29  ;;  %2768 = vmatprep.mubr.bf16.mxu1 %v1527_v28 }
 0x16e   : > { %v1480_v33 = vadd.f32 %v2806_v59, %v3306_v8  ;;  %2769 = vmatmul.mubr.bf16.gmra.mrb[52].mxu1 %v1528_v6  ;;  %v1511_v34 = vmax.f32 %v1479_v9, 0.0 }
 0x16f   : > { %v1478_v20 = vadd.f32 %v2807_v32, %v3306_v8  ;;  %v1509_v22 = vmax.f32 %v1477_v31, 0.0 }
 0x170   : > { %v1512_v60 = vmax.f32 %v1480_v33, 0.0 }
 0x171   : > { %v1510_v35 = vmax.f32 %v1478_v20, 0.0  ;;  %v2730_v36 = vpop.f32.mrb[28].mxu0 }
 0x172   : > { %v2808_v61 = vadd.f32 %v2730_v36, %v3325_v42  ;;  %v1399_v37 = vpop.f32.mrb[29].mxu0  ;;  %v1530_v25 = vpack.c.bf16 %v1512_v60, %v1511_v34 }
 0x173   : > { %v2809_v38 = vadd.f32 %v1399_v37, %v3328_v44  ;;  %v2731_v39 = vpop.f32.mrb[30].mxu0  ;;  %v1529_v40 = vpack.c.bf16 %v1510_v35, %v1509_v22 }
 0x174   : > { %v1483_v29 = vadd.f32 %v2808_v61, %v3306_v8  ;;  %v2810_v62 = vadd.f32 %v2731_v39, %v3330_v47  ;;  %v1402_v41 = vpop.f32.mrb[31].mxu0  ;;  %v1767_v47 = vlaneseq }
 0x175   : > { %v1481_v43 = vadd.f32 %v2809_v38, %v3306_v8  ;;  %v2811_v45 = vadd.f32 %v1402_v41, %v3332_v51  ;;  %2772 = vmatprep.mubr.bf16.mxu1 %v1529_v40  ;;  %v3384_v51 = vld [vmem:[%s3928_s8] ss:$0 sm:$0xff] }
 0x176   : > { %v1484_v63 = vadd.f32 %v2810_v62, %v3306_v8  ;;  %2773 = vmatmul.mubr.bf16.gmra.mrb[56].mxu1 %v1530_v25  ;;  %v1515_v46 = vmax.f32 %v1483_v29, 0.0  ;;  %v1768_v0 = vand.u32 127, %v1767_v47 }
 0x177   : > { %v1482_v42 = vadd.f32 %v2811_v45, %v3306_v8  ;;  %v1513_v44 = vmax.f32 %v1481_v43, 0.0 }
 0x178   : > { %v1516_v48 = vmax.f32 %v1484_v63, 0.0  ;;  %vm1769_vm0 = vcmp.lt.s32.totalorder %v1768_v0, 32 }
 0x179   : > { %v1514_v49 = vmax.f32 %v1482_v42, 0.0  ;;  %v3386_v1 = vsel %vm1769_vm0, 1.0, %v3021_v54 }
 0x17a   : > { %v1532_v50 = vpack.c.bf16 %v1516_v48, %v1515_v46 }
 0x17b   : > { %v1531_v52 = vpack.c.bf16 %v1514_v49, %v1513_v44 }
 0x17d   : > { %2776 = vmatprep.mubr.bf16.mxu1 %v1531_v52 }
 0x17e   : > { %2777 = vmatmul.mubr.bf16.gmra.mrb[60].mxu1 %v1532_v50 }
 0x219   : > { %v2750_v53 = vpop.f32.mrb[32].mxu1 }
 0x21a   : > { %v3389_v8 = vadd.f32 %v2750_v53, %v3384_v51  ;;  %v1638_v55 = vpop.f32.mrb[33].mxu1 }
 0x21b   : > { %v3392_v7 = vadd.f32 %v3384_v51, %v1638_v55  ;;  %v2751_v10 = vpop.f32.mrb[34].mxu1 }
 0x21c   : > { %v3395_v11 = vadd.f32 %v2751_v10, %v3384_v51  ;;  %v1641_v2 = vpop.f32.mrb[35].mxu1  ;;  %v1774_v12 = vmul.f32 %v3386_v1, %v3389_v8 }
 0x21d   : > { %v3400_v13 = vadd.f32 %v3384_v51, %v1641_v2  ;;  %v1772_v14 = vmul.f32 %v3386_v1, %v3392_v7 }
 0x21e   : > { %1808 = vadd.xlane.f32.xlu1 %v1774_v12  ;;  %v1775_v3 = vmul.f32 %v3386_v1, %v3395_v11 }
 0x21f   : > { %1804 = vadd.xlane.f32.xlu0 %v1772_v14  ;;  %v1773_v16 = vmul.f32 %v3386_v1, %v3400_v13 }
 0x221   : > { %v2754_v15 = vpop.f32.mrb[36].mxu1 }
 0x222   : > { %v3409_v56 = vadd.f32 %v2754_v15, %v3384_v51  ;;  %1810 = vadd.xlane.f32.xlu1 %v1775_v3  ;;  %v1654_v17 = vpop.f32.mrb[37].mxu1 }
 0x223   : > { %1806 = vadd.xlane.f32.xlu0 %v1773_v16  ;;  %v2755_v18 = vpop.f32.mrb[38].mxu1  ;;  %v3417_v5 = vadd.f32 %v3384_v51, %v1654_v17 }
 0x224   : > { %v3412_v4 = vadd.f32 %v2755_v18, %v3384_v51  ;;  %v1657_v57 = vpop.f32.mrb[39].mxu1  ;;  %v1778_v19 = vmul.f32 %v3386_v1, %v3409_v56 }
 0x225   : > { %v3420_v21 = vadd.f32 %v3384_v51, %v1657_v57  ;;  %v1776_v58 = vmul.f32 %v3386_v1, %v3417_v5 }
 0x226   : > { %v1779_v23 = vmul.f32 %v3386_v1, %v3412_v4 }
 0x227   : > { %1816 = vadd.xlane.f32.xlu0 %v1778_v19  ;;  %v1777_v27 = vmul.f32 %v3386_v1, %v3420_v21 }
 0x228   : > { %1818 = vadd.xlane.f32.xlu1 %v1779_v23 }
 0x229   : > { %v2758_v24 = vpop.f32.mrb[40].mxu1 }
 0x22a   : > { %v3427_v6 = vadd.f32 %v2758_v24, %v3384_v51  ;;  %v1670_v26 = vpop.f32.mrb[41].mxu1 }
 0x22b   : > { %1812 = vadd.xlane.f32.xlu0 %v1776_v58  ;;  %v2759_v28 = vpop.f32.mrb[42].mxu1  ;;  %v3437_v31 = vadd.f32 %v3384_v51, %v1670_v26 }
 0x22c   : > { %v3432_v9 = vadd.f32 %v2759_v28, %v3384_v51  ;;  %1814 = vadd.xlane.f32.xlu1 %v1777_v27  ;;  %v1673_v59 = vpop.f32.mrb[43].mxu1  ;;  %v1782_v30 = vmul.f32 %v3386_v1, %v3427_v6 }
 0x22d   : > { %v3440_v32 = vadd.f32 %v3384_v51, %v1673_v59  ;;  %v1780_v34 = vmul.f32 %v3386_v1, %v3437_v31 }
 0x22e   : > { %v1783_v33 = vmul.f32 %v3386_v1, %v3432_v9 }
 0x22f   : > { %1824 = vadd.xlane.f32.xlu0 %v1782_v30  ;;  %v1781_v35 = vmul.f32 %v3386_v1, %v3440_v32 }
 0x230   : > { %1826 = vadd.xlane.f32.xlu1 %v1783_v33 }
 0x231   : > { %v2762_v20 = vpop.f32.mrb[44].mxu1 }
 0x232   : > { %v3447_v60 = vadd.f32 %v2762_v20, %v3384_v51  ;;  %v1686_v22 = vpop.f32.mrb[45].mxu1 }
 0x233   : > { %1820 = vadd.xlane.f32.xlu0 %v1780_v34  ;;  %v2763_v36 = vpop.f32.mrb[46].mxu1  ;;  %v3457_v38 = vadd.f32 %v3384_v51, %v1686_v22 }
 0x234   : > { %v3452_v61 = vadd.f32 %v2763_v36, %v3384_v51  ;;  %1822 = vadd.xlane.f32.xlu1 %v1781_v35  ;;  %v1689_v37 = vpop.f32.mrb[47].mxu1  ;;  %v1786_v25 = vmul.f32 %v3386_v1, %v3447_v60 }
 0x235   : > { %v3460_v39 = vadd.f32 %v3384_v51, %v1689_v37  ;;  %v1784_v62 = vmul.f32 %v3386_v1, %v3457_v38 }
 0x236   : > { %v1787_v40 = vmul.f32 %v3386_v1, %v3452_v61 }
 0x237   : > { %1832 = vadd.xlane.f32.xlu0 %v1786_v25  ;;  %v1785_v45 = vmul.f32 %v3386_v1, %v3460_v39 }
 0x238   : > { %1834 = vadd.xlane.f32.xlu1 %v1787_v40 }
 0x239   : > { %v2766_v29 = vpop.f32.mrb[48].mxu1 }
 0x23a   : > { %v3467_v41 = vadd.f32 %v2766_v29, %v3384_v51  ;;  %v1702_v43 = vpop.f32.mrb[49].mxu1 }
 0x23b   : > { %1828 = vadd.xlane.f32.xlu0 %v1784_v62  ;;  %v2767_v63 = vpop.f32.mrb[50].mxu1  ;;  %v3477_v44 = vadd.f32 %v3384_v51, %v1702_v43 }
 0x23c   : > { %v3472_v42 = vadd.f32 %v2767_v63, %v3384_v51  ;;  %1830 = vadd.xlane.f32.xlu1 %v1785_v45  ;;  %v1705_v46 = vpop.f32.mrb[51].mxu1  ;;  %v1790_v48 = vmul.f32 %v3386_v1, %v3467_v41 }
 0x23d   : > { %v3480_v49 = vadd.f32 %v3384_v51, %v1705_v46  ;;  %v1788_v47 = vmul.f32 %v3386_v1, %v3477_v44 }
 0x23e   : > { %v1791_v50 = vmul.f32 %v3386_v1, %v3472_v42 }
 0x23f   : > { %1840 = vadd.xlane.f32.xlu0 %v1790_v48  ;;  %v1789_v54 = vmul.f32 %v3386_v1, %v3480_v49 }
 0x240   : > { %1842 = vadd.xlane.f32.xlu1 %v1791_v50 }
 0x241   : > { %v2770_v52 = vpop.f32.mrb[52].mxu1 }
 0x242   : > { %v3487_v0 = vadd.f32 %v2770_v52, %v3384_v51  ;;  %v1718_v53 = vpop.f32.mrb[53].mxu1 }
 0x243   : > { %1836 = vadd.xlane.f32.xlu0 %v1788_v47  ;;  %v2771_v55 = vpop.f32.mrb[54].mxu1  ;;  %v3497_v14 = vadd.f32 %v3384_v51, %v1718_v53 }
 0x244   : > { %v3492_v10 = vadd.f32 %v2771_v55, %v3384_v51  ;;  %1838 = vadd.xlane.f32.xlu1 %v1789_v54  ;;  %v1721_v2 = vpop.f32.mrb[55].mxu1  ;;  %v1794_v12 = vmul.f32 %v3386_v1, %v3487_v0 }
 0x245   : > { %v3500_v3 = vadd.f32 %v3384_v51, %v1721_v2  ;;  %v1792_v17 = vmul.f32 %v3386_v1, %v3497_v14 }
 0x246   : > { %v1795_v15 = vmul.f32 %v3386_v1, %v3492_v10 }
 0x247   : > { %1848 = vadd.xlane.f32.xlu0 %v1794_v12  ;;  %v1793_v19 = vmul.f32 %v3386_v1, %v3500_v3 }
 0x248   : > { %1850 = vadd.xlane.f32.xlu1 %v1795_v15 }
 0x249   : > { %v2774_v16 = vpop.f32.mrb[56].mxu1 }
 0x24a   : > { %v3507_v18 = vadd.f32 %v2774_v16, %v3384_v51  ;;  %v1734_v57 = vpop.f32.mrb[57].mxu1 }
 0x24b   : > { %1844 = vadd.xlane.f32.xlu0 %v1792_v17  ;;  %v2775_v23 = vpop.f32.mrb[58].mxu1  ;;  %v3517_v27 = vadd.f32 %v3384_v51, %v1734_v57 }
 0x24c   : > { %v3512_v24 = vadd.f32 %v2775_v23, %v3384_v51  ;;  %1846 = vadd.xlane.f32.xlu1 %v1793_v19  ;;  %v1737_v58 = vpop.f32.mrb[59].mxu1  ;;  %v1798_v26 = vmul.f32 %v3386_v1, %v3507_v18 }
 0x24d   : > { %v3520_v28 = vadd.f32 %v3384_v51, %v1737_v58  ;;  %v1796_v33 = vmul.f32 %v3386_v1, %v3517_v27 }
 0x24e   : > { %v1799_v59 = vmul.f32 %v3386_v1, %v3512_v24 }
 0x24f   : > { %1856 = vadd.xlane.f32.xlu0 %v1798_v26  ;;  %v1797_v34 = vmul.f32 %v3386_v1, %v3520_v28 }
 0x250   : > { %1858 = vadd.xlane.f32.xlu1 %v1799_v59 }
 0x251   : > { %v2778_v30 = vpop.f32.mrb[60].mxu1 }
 0x252   : > { %v1750_v20 = vpop.f32.mrb[61].mxu1  ;;  %v3532_v37 = vadd.f32 %v2778_v30, %v3384_v51 }
 0x253   : > { %v3529_v22 = vadd.f32 %v3384_v51, %v1750_v20  ;;  %1852 = vadd.xlane.f32.xlu0 %v1796_v33  ;;  %v2779_v35 = vpop.f32.mrb[62].mxu1 }
 0x254   : > { %1854 = vadd.xlane.f32.xlu1 %v1797_v34  ;;  %v1753_v36 = vpop.f32.mrb[63].mxu1  ;;  %v3540_v29 = vadd.f32 %v2779_v35, %v3384_v51  ;;  %v1802_v43 = vmul.f32 %v3386_v1, %v3532_v37 }
 0x255   : > { %v3535_v25 = vadd.f32 %v3384_v51, %v1753_v36  ;;  %v1800_v40 = vmul.f32 %v3386_v1, %v3529_v22 }
 0x256   : > { %v1803_v45 = vmul.f32 %v3386_v1, %v3540_v29 }
 0x257   : > { %1860 = vadd.xlane.f32.xlu0 %v1800_v40  ;;  %v1801_v62 = vmul.f32 %v3386_v1, %v3535_v25 }
 0x259   : > { %1862 = vadd.xlane.f32.xlu1 %v1801_v62 }
 0x25b   : > { %1864 = vadd.xlane.f32.xlu0 %v1802_v43 }
 0x25d   : > { %1866 = vadd.xlane.f32.xlu1 %v1803_v45 }
 0x2ab   : > { %v1809_v63 = vpop.xlane.xlu1 %1808 }
 0x2ac   : > { %v1870_v46 = vmul.f32 0.03125, %v1809_v63  ;;  %v1805_v48 = vpop.xlane.xlu0 %1804 }
 0x2ad   : > { %v1868_v50 = vmul.f32 0.03125, %v1805_v48 }
 0x2ae   : > { %v1902_v51 = vsub.f32 %v3389_v8, %v1870_v46 }
 0x2af   : > { %v1900_v52 = vsub.f32 %v3392_v7, %v1868_v50  ;;  %v1811_v47 = vpop.xlane.xlu1 %1810 }
 0x2b0   : > { %v1871_v53 = vmul.f32 0.03125, %v1811_v47  ;;  %v1807_v54 = vpop.xlane.xlu0 %1806  ;;  %v3551_v55 = vmul.f32 %v3386_v1, %v1902_v51 }
 0x2b1   : > { %v1869_v2 = vmul.f32 0.03125, %v1807_v54  ;;  %v3557_v16 = vmul.f32 %v3386_v1, %v1900_v52 }
 0x2b2   : > { %v1903_v12 = vsub.f32 %v3395_v11, %v1871_v53  ;;  %v1966_v15 = vmul.f32 %v3551_v55, %v3551_v55 }
 0x2b3   : > { %v1901_v17 = vsub.f32 %v3400_v13, %v1869_v2  ;;  %v1964_v11 = vmul.f32 %v3557_v16, %v3557_v16 }
 0x2b4   : > { %v1817_v8 = vpop.xlane.xlu0 %1816  ;;  %2000 = vadd.xlane.f32.xlu0 %v1966_v15  ;;  %v3561_v7 = vmul.f32 %v3386_v1, %v1903_v12 }
 0x2b5   : > { %v1874_v57 = vmul.f32 0.03125, %v1817_v8  ;;  %v1819_v19 = vpop.xlane.xlu1 %1818  ;;  %v3568_v26 = vmul.f32 %v3386_v1, %v1901_v17 }
 0x2b6   : > { %v1875_v23 = vmul.f32 0.03125, %v1819_v19  ;;  %v1967_v58 = vmul.f32 %v3561_v7, %v3561_v7 }
 0x2b7   : > { %v1906_v59 = vsub.f32 %v3409_v56, %v1874_v57  ;;  %v1965_v36 = vmul.f32 %v3568_v26, %v3568_v26 }
 0x2b8   : > { %v1907_v13 = vsub.f32 %v3412_v4, %v1875_v23  ;;  %v1813_v30 = vpop.xlane.xlu0 %1812  ;;  %2002 = vadd.xlane.f32.xlu1 %v1967_v58  ;;  %1996 = vadd.xlane.f32.xlu0 %v1964_v11 }
 0x2b9   : > { %v1872_v33 = vmul.f32 0.03125, %v1813_v30  ;;  %v1815_v20 = vpop.xlane.xlu1 %1814  ;;  %v3573_v34 = vmul.f32 %v3386_v1, %v1906_v59 }
 0x2ba   : > { %v1873_v35 = vmul.f32 0.03125, %v1815_v20  ;;  %v3578_v40 = vmul.f32 %v3386_v1, %v1907_v13 }
 0x2bb   : > { %v1904_v62 = vsub.f32 %v3417_v5, %v1872_v33  ;;  %v1970_v56 = vmul.f32 %v3573_v34, %v3573_v34 }
 0x2bc   : > { %v1905_v4 = vsub.f32 %v3420_v21, %v1873_v35  ;;  %v1825_v43 = vpop.xlane.xlu0 %1824  ;;  %1998 = vadd.xlane.f32.xlu1 %v1965_v36  ;;  %v1971_v50 = vmul.f32 %v3578_v40, %v3578_v40 }
 0x2bd   : > { %v1878_v45 = vmul.f32 0.03125, %v1825_v43  ;;  %v1827_v63 = vpop.xlane.xlu1 %1826  ;;  %2008 = vadd.xlane.f32.xlu0 %v1970_v56  ;;  %v3585_v46 = vmul.f32 %v3386_v1, %v1904_v62 }
 0x2be   : > { %v1879_v48 = vmul.f32 0.03125, %v1827_v63  ;;  %v3590_v51 = vmul.f32 %v3386_v1, %v1905_v4 }
 0x2bf   : > { %v1910_v5 = vsub.f32 %v3427_v6, %v1878_v45  ;;  %v1968_v21 = vmul.f32 %v3585_v46, %v3585_v46 }
 0x2c0   : > { %v1911_v52 = vsub.f32 %v3432_v9, %v1879_v48  ;;  %v1821_v47 = vpop.xlane.xlu0 %1820  ;;  %2010 = vadd.xlane.f32.xlu1 %v1971_v50  ;;  %v1969_v15 = vmul.f32 %v3590_v51, %v3590_v51 }
 0x2c1   : > { %v1876_v53 = vmul.f32 0.03125, %v1821_v47  ;;  %v1823_v54 = vpop.xlane.xlu1 %1822  ;;  %2004 = vadd.xlane.f32.xlu0 %v1968_v21  ;;  %v3597_v2 = vmul.f32 %v3386_v1, %v1910_v5 }
 0x2c2   : > { %v1877_v12 = vmul.f32 0.03125, %v1823_v54  ;;  %v3602_v17 = vmul.f32 %v3386_v1, %v1911_v52 }
 0x2c3   : > { %v1908_v6 = vsub.f32 %v3437_v31, %v1876_v53  ;;  %v1974_v9 = vmul.f32 %v3597_v2, %v3597_v2 }
 0x2c4   : > { %v1909_v8 = vsub.f32 %v3440_v32, %v1877_v12  ;;  %v1833_v57 = vpop.xlane.xlu0 %1832  ;;  %2006 = vadd.xlane.f32.xlu1 %v1969_v15  ;;  %v1975_v59 = vmul.f32 %v3602_v17, %v3602_v17 }
 0x2c5   : > { %v1882_v19 = vmul.f32 0.03125, %v1833_v57  ;;  %v1835_v23 = vpop.xlane.xlu1 %1834  ;;  %2016 = vadd.xlane.f32.xlu0 %v1974_v9  ;;  %v3609_v58 = vmul.f32 %v3386_v1, %v1908_v6 }
 0x2c6   : > { %v1883_v11 = vmul.f32 0.03125, %v1835_v23  ;;  %v3614_v13 = vmul.f32 %v3386_v1, %v1909_v8 }
 0x2c7   : > { %v1914_v31 = vsub.f32 %v3447_v60, %v1882_v19  ;;  %v1972_v32 = vmul.f32 %v3609_v58, %v3609_v58 }
 0x2c8   : > { %v1915_v30 = vsub.f32 %v3452_v61, %v1883_v11  ;;  %v1829_v33 = vpop.xlane.xlu0 %1828  ;;  %2018 = vadd.xlane.f32.xlu1 %v1975_v59  ;;  %v1973_v56 = vmul.f32 %v3614_v13, %v3614_v13 }
 0x2c9   : > { %v1880_v20 = vmul.f32 0.03125, %v1829_v33  ;;  %v1831_v35 = vpop.xlane.xlu1 %1830  ;;  %2012 = vadd.xlane.f32.xlu0 %v1972_v32  ;;  %v3621_v36 = vmul.f32 %v3386_v1, %v1914_v31 }
 0x2ca   : > { %v1881_v62 = vmul.f32 0.03125, %v1831_v35  ;;  %v3626_v4 = vmul.f32 %v3386_v1, %v1915_v30 }
 0x2cb   : > { %v1912_v60 = vsub.f32 %v3457_v38, %v1880_v20  ;;  %v1978_v61 = vmul.f32 %v3621_v36, %v3621_v36 }
 0x2cc   : > { %v1913_v43 = vsub.f32 %v3460_v39, %v1881_v62  ;;  %v1841_v45 = vpop.xlane.xlu0 %1840  ;;  %2014 = vadd.xlane.f32.xlu1 %v1973_v56  ;;  %v1979_v21 = vmul.f32 %v3626_v4, %v3626_v4 }
 0x2cd   : > { %v1886_v63 = vmul.f32 0.03125, %v1841_v45  ;;  %v1843_v48 = vpop.xlane.xlu1 %1842  ;;  %2024 = vadd.xlane.f32.xlu0 %v1978_v61  ;;  %v3633_v50 = vmul.f32 %v3386_v1, %v1912_v60 }
 0x2ce   : > { %v1887_v5 = vmul.f32 0.03125, %v1843_v48  ;;  %v3638_v52 = vmul.f32 %v3386_v1, %v1913_v43 }
 0x2cf   : > { %v1918_v38 = vsub.f32 %v3467_v41, %v1886_v63  ;;  %v1976_v39 = vmul.f32 %v3633_v50, %v3633_v50 }
 0x2d0   : > { %v1919_v47 = vsub.f32 %v3472_v42, %v1887_v5  ;;  %v1837_v53 = vpop.xlane.xlu0 %1836  ;;  %2026 = vadd.xlane.f32.xlu1 %v1979_v21  ;;  %v1977_v9 = vmul.f32 %v3638_v52, %v3638_v52 }
 0x2d1   : > { %v1884_v54 = vmul.f32 0.03125, %v1837_v53  ;;  %v1839_v12 = vpop.xlane.xlu1 %1838  ;;  %2020 = vadd.xlane.f32.xlu0 %v1976_v39  ;;  %v3645_v15 = vmul.f32 %v3386_v1, %v1918_v38 }
 0x2d2   : > { %v1885_v6 = vmul.f32 0.03125, %v1839_v12  ;;  %v3650_v8 = vmul.f32 %v3386_v1, %v1919_v47 }
 0x2d3   : > { %v1916_v41 = vsub.f32 %v3477_v44, %v1884_v54  ;;  %v1982_v42 = vmul.f32 %v3645_v15, %v3645_v15 }
 0x2d4   : > { %v1917_v57 = vsub.f32 %v3480_v49, %v1885_v6  ;;  %v1849_v19 = vpop.xlane.xlu0 %1848  ;;  %2022 = vadd.xlane.f32.xlu1 %v1977_v9  ;;  %v1983_v32 = vmul.f32 %v3650_v8, %v3650_v8 }
 0x2d5   : > { %v1890_v23 = vmul.f32 0.03125, %v1849_v19  ;;  %v1851_v11 = vpop.xlane.xlu1 %1850  ;;  %2032 = vadd.xlane.f32.xlu0 %v1982_v42  ;;  %v3657_v59 = vmul.f32 %v3386_v1, %v1916_v41 }
 0x2d6   : > { %v1891_v31 = vmul.f32 0.03125, %v1851_v11  ;;  %v3662_v30 = vmul.f32 %v3386_v1, %v1917_v57 }
 0x2d7   : > { %v1922_v44 = vsub.f32 %v3487_v0, %v1890_v23  ;;  %v1980_v49 = vmul.f32 %v3657_v59, %v3657_v59 }
 0x2d8   : > { %v1923_v33 = vsub.f32 %v3492_v10, %v1891_v31  ;;  %v1845_v20 = vpop.xlane.xlu0 %1844  ;;  %2034 = vadd.xlane.f32.xlu1 %v1983_v32  ;;  %v1981_v61 = vmul.f32 %v3662_v30, %v3662_v30 }
 0x2d9   : > { %v1888_v35 = vmul.f32 0.03125, %v1845_v20  ;;  %v1847_v62 = vpop.xlane.xlu1 %1846  ;;  %2028 = vadd.xlane.f32.xlu0 %v1980_v49  ;;  %v3669_v56 = vmul.f32 %v3386_v1, %v1922_v44 }
 0x2da   : > { %v1889_v60 = vmul.f32 0.03125, %v1847_v62  ;;  %v3674_v43 = vmul.f32 %v3386_v1, %v1923_v33 }
 0x2db   : > { %v1920_v0 = vsub.f32 %v3497_v14, %v1888_v35  ;;  %v1986_v10 = vmul.f32 %v3669_v56, %v3669_v56 }
 0x2dc   : > { %v1921_v45 = vsub.f32 %v3500_v3, %v1889_v60  ;;  %v1857_v63 = vpop.xlane.xlu0 %1856  ;;  %2030 = vadd.xlane.f32.xlu1 %v1981_v61  ;;  %v1987_v39 = vmul.f32 %v3674_v43, %v3674_v43 }
 0x2dd   : > { %v1894_v48 = vmul.f32 0.03125, %v1857_v63  ;;  %v1859_v5 = vpop.xlane.xlu1 %1858  ;;  %2040 = vadd.xlane.f32.xlu0 %v1986_v10  ;;  %v3681_v21 = vmul.f32 %v3386_v1, %v1920_v0 }
 0x2de   : > { %v1895_v38 = vmul.f32 0.03125, %v1859_v5  ;;  %v3686_v47 = vmul.f32 %v3386_v1, %v1921_v45 }
 0x2df   : > { %v1926_v14 = vsub.f32 %v3507_v18, %v1894_v48  ;;  %v1984_v3 = vmul.f32 %v3681_v21, %v3681_v21 }
 0x2e0   : > { %v1927_v53 = vsub.f32 %v3512_v24, %v1895_v38  ;;  %v1853_v54 = vpop.xlane.xlu0 %1852  ;;  %2042 = vadd.xlane.f32.xlu1 %v1987_v39  ;;  %v1985_v42 = vmul.f32 %v3686_v47, %v3686_v47 }
 0x2e1   : > { %v1892_v12 = vmul.f32 0.03125, %v1853_v54  ;;  %v1855_v6 = vpop.xlane.xlu1 %1854  ;;  %2036 = vadd.xlane.f32.xlu0 %v1984_v3  ;;  %v3693_v9 = vmul.f32 %v3386_v1, %v1926_v14 }
 0x2e2   : > { %v1893_v41 = vmul.f32 0.03125, %v1855_v6  ;;  %v3698_v57 = vmul.f32 %v3386_v1, %v1927_v53 }
 0x2e3   : > { %v1924_v18 = vsub.f32 %v3517_v27, %v1892_v12  ;;  %v1990_v24 = vmul.f32 %v3693_v9, %v3693_v9 }
 0x2e4   : > { %v1925_v19 = vsub.f32 %v3520_v28, %v1893_v41  ;;  %2038 = vadd.xlane.f32.xlu1 %v1985_v42  ;;  %v1861_v23 = vpop.xlane.xlu0 %1860  ;;  %v1991_v44 = vmul.f32 %v3698_v57, %v3698_v57 }
 0x2e5   : > { %v1896_v11 = vmul.f32 0.03125, %v1861_v23  ;;  %2048 = vadd.xlane.f32.xlu0 %v1990_v24  ;;  %v3705_v31 = vmul.f32 %v3386_v1, %v1924_v18 }
 0x2e6   : > { %v1863_v32 = vpop.xlane.xlu1 %1862  ;;  %v3710_v49 = vmul.f32 %v3386_v1, %v1925_v19 }
 0x2e7   : > { %v1928_v27 = vsub.f32 %v3529_v22, %v1896_v11  ;;  %v1897_v33 = vmul.f32 0.03125, %v1863_v32  ;;  %v1988_v28 = vmul.f32 %v3705_v31, %v3705_v31 }
 0x2e8   : > { %2050 = vadd.xlane.f32.xlu1 %v1991_v44  ;;  %v1865_v20 = vpop.xlane.xlu0 %1864  ;;  %v1989_v0 = vmul.f32 %v3710_v49, %v3710_v49 }
 0x2e9   : > { %v1929_v35 = vsub.f32 %v3535_v25, %v1897_v33  ;;  %v1898_v62 = vmul.f32 0.03125, %v1865_v20  ;;  %2044 = vadd.xlane.f32.xlu0 %v1988_v28  ;;  %v3717_v60 = vmul.f32 %v3386_v1, %v1928_v27  ;;  %v3743_v20 = vld [vmem:[%s3929_s9] ss:$0 sm:$0xff] }
 0x2ea   : > { %v1867_v61 = vpop.xlane.xlu1 %1866 }
 0x2eb   : > { %v1930_v10 = vsub.f32 %v3532_v37, %v1898_v62  ;;  %v1899_v22 = vmul.f32 0.03125, %v1867_v61  ;;  %v1992_v45 = vmul.f32 %v3717_v60, %v3717_v60  ;;  %v3725_v63 = vmul.f32 %v3386_v1, %v1929_v35 }
 0x2ec   : > { %2046 = vadd.xlane.f32.xlu1 %v1989_v0 }
 0x2ed   : > { %v1931_v25 = vsub.f32 %v3540_v29, %v1899_v22  ;;  %2052 = vadd.xlane.f32.xlu0 %v1992_v45  ;;  %v1993_v48 = vmul.f32 %v3725_v63, %v3725_v63  ;;  %v3731_v5 = vmul.f32 %v3386_v1, %v1930_v10  ;;  %v3749_v10 = vld [vmem:[%s3930_s10] ss:$0 sm:$0xff] }
 0x2ef   : > { %v1994_v37 = vmul.f32 %v3731_v5, %v3731_v5  ;;  %v3736_v38 = vmul.f32 %v3386_v1, %v1931_v25 }
 0x2f0   : > { %2054 = vadd.xlane.f32.xlu1 %v1993_v48 }
 0x2f1   : > { %2056 = vadd.xlane.f32.xlu0 %v1994_v37  ;;  %v1995_v39 = vmul.f32 %v3736_v38, %v3736_v38 }
 0x2f4   : > { %2058 = vadd.xlane.f32.xlu1 %v1995_v39 }
 0x341   : > { %v2001_v29 = vpop.xlane.xlu0 %2000 }
 0x342   : > { %v2062_v14 = vmul.f32 0.03125, %v2001_v29 }
 0x344   : > { %v2094_v3 = vadd.f32 1e-05, %v2062_v14 }
 0x345   : > { %v2003_v53 = vpop.xlane.xlu1 %2002  ;;  %v1997_v54 = vpop.xlane.xlu0 %1996 }
 0x346   : > { %2917 = vrsqrt.f32 %v2094_v3  ;;  %v2063_v12 = vmul.f32 0.03125, %v2003_v53  ;;  %v2060_v6 = vmul.f32 0.03125, %v1997_v54 }
 0x348   : > { %v2095_v41 = vadd.f32 1e-05, %v2063_v12  ;;  %v2092_v42 = vadd.f32 1e-05, %v2060_v6 }
 0x349   : > { %v1999_v18 = vpop.xlane.xlu1 %1998 }
 0x34a   : > { %2919 = vrsqrt.f32 %v2095_v41  ;;  %v2061_v1 = vmul.f32 0.03125, %v1999_v18  ;;  %v2009_v24 = vpop.xlane.xlu0 %2008  ;;  %v2981_v41 = vld [vmem:[%s3224_s25 + $0x10] sm:$0xff] }
 0x34b   : > { %2921 = vrsqrt.f32 %v2092_v42  ;;  %v2066_v19 = vmul.f32 0.03125, %v2009_v24 }
 0x34c   : > { %v2093_v23 = vadd.f32 1e-05, %v2061_v1 }
 0x34d   : > { %v2098_v11 = vadd.f32 1e-05, %v2066_v19  ;;  %v2011_v32 = vpop.xlane.xlu1 %2010 }
 0x34e   : > { %2923 = vrsqrt.f32 %v2093_v23  ;;  %v2067_v44 = vmul.f32 0.03125, %v2011_v32  ;;  %v2005_v27 = vpop.xlane.xlu0 %2004 }
 0x34f   : > { %2925 = vrsqrt.f32 %v2098_v11  ;;  %v2064_v33 = vmul.f32 0.03125, %v2005_v27 }
 0x350   : > { %v2918_v28 = vpop.eup %2917  ;;  %v2099_v35 = vadd.f32 1e-05, %v2067_v44 }
 0x351   : > { %v2158_v62 = vmul.f32 %v2918_v28, %v3551_v55  ;;  %v2096_v61 = vadd.f32 1e-05, %v2064_v33  ;;  %v2007_v0 = vpop.xlane.xlu1 %2006 }
 0x352   : > { %2927 = vrsqrt.f32 %v2099_v35  ;;  %v2065_v22 = vmul.f32 0.03125, %v2007_v0  ;;  %v2017_v45 = vpop.xlane.xlu0 %2016 }
 0x353   : > { %v2196_v25 = vmul.f32 %v3743_v20, %v2158_v62  ;;  %2929 = vrsqrt.f32 %v2096_v61  ;;  %v2070_v48 = vmul.f32 0.03125, %v2017_v45  ;;  %v2982_v62 = vld [vmem:[%s3224_s25 + $0x18] sm:$0xff] }
 0x354   : > { %v2920_v37 = vpop.eup %2919  ;;  %v2097_v39 = vadd.f32 1e-05, %v2065_v22 }
 0x355   : > { %v2922_v29 = vpop.eup %2921  ;;  %v2234_v55 = vadd.f32 %v3749_v10, %v2196_v25  ;;  %v2159_v14 = vmul.f32 %v2920_v37, %v3561_v7  ;;  %v2102_v3 = vadd.f32 1e-05, %v2070_v48  ;;  %v2019_v53 = vpop.xlane.xlu1 %2018  ;;  %v2983_v25 = vld [vmem:[%s3224_s25] sm:$0xff] }
 0x356   : > { %v2156_v54 = vmul.f32 %v2922_v29, %v3557_v16  ;;  %2931 = vrsqrt.f32 %v2097_v39  ;;  %v2071_v12 = vmul.f32 0.03125, %v2019_v53  ;;  %v2013_v6 = vpop.xlane.xlu0 %2012 }
 0x357   : > { %v2266_v42 = vadd.f32 %v2981_v41, %v2234_v55  ;;  %v2197_v18 = vmul.f32 %v3743_v20, %v2159_v14  ;;  %2933 = vrsqrt.f32 %v2102_v3  ;;  %v2068_v7 = vmul.f32 0.03125, %v2013_v6  ;;  %v2984_v6 = vld [vmem:[%s3224_s25 + $0x8] sm:$0xff] }
 0x358   : > { %v2924_v1 = vpop.eup %2923  ;;  %v2194_v24 = vmul.f32 %v3743_v20, %v2156_v54  ;;  %v2103_v19 = vadd.f32 1e-05, %v2071_v12 }
 0x359   : > { %v2926_v23 = vpop.eup %2925  ;;  %2298 = vst [vmem:[%s3759_s28 + $0x10] sm:$0xff] %v2266_v42  ;;  %v2235_v11 = vadd.f32 %v3749_v10, %v2197_v18  ;;  %v2157_v16 = vmul.f32 %v2924_v1, %v3568_v26  ;;  %v2100_v32 = vadd.f32 1e-05, %v2068_v7  ;;  %v2015_v44 = vpop.xlane.xlu1 %2014 }
 0x35a   : > { %v2232_v27 = vadd.f32 %v3749_v10, %v2194_v24  ;;  %v2162_v33 = vmul.f32 %v2926_v23, %v3573_v34  ;;  %2935 = vrsqrt.f32 %v2103_v19  ;;  %v2069_v28 = vmul.f32 0.03125, %v2015_v44  ;;  %v2025_v35 = vpop.xlane.xlu0 %2024 }
 0x35b   : > { %v2267_v61 = vadd.f32 %v2982_v62, %v2235_v11  ;;  %v2195_v0 = vmul.f32 %v3743_v20, %v2157_v16  ;;  %2937 = vrsqrt.f32 %v2100_v32  ;;  %v2074_v22 = vmul.f32 0.03125, %v2025_v35  ;;  %v2986_v35 = vld [vmem:[%s3224_s25 + $0x38] sm:$0xff] }
 0x35c   : > { %v2928_v45 = vpop.eup %2927  ;;  %v2264_v26 = vadd.f32 %v2983_v25, %v2232_v27  ;;  %v2200_v48 = vmul.f32 %v3743_v20, %v2162_v33  ;;  %v2101_v37 = vadd.f32 1e-05, %v2069_v28 }
 0x35d   : > { %v2930_v39 = vpop.eup %2929  ;;  %2299 = vst [vmem:[%s3759_s28 + $0x18] sm:$0xff] %v2267_v61  ;;  %v2233_v34 = vadd.f32 %v3749_v10, %v2195_v0  ;;  %v2163_v29 = vmul.f32 %v2928_v45, %v3578_v40  ;;  %v2106_v55 = vadd.f32 1e-05, %v2074_v22  ;;  %v2027_v14 = vpop.xlane.xlu1 %2026  ;;  %v2985_v40 = vld [vmem:[%s3224_s25 + $0x30] sm:$0xff] }
 0x35e   : > { %2296 = vst [vmem:[%s3759_s28] sm:$0xff] %v2264_v26  ;;  %v2238_v3 = vadd.f32 %v3749_v10, %v2200_v48  ;;  %v2160_v53 = vmul.f32 %v2930_v39, %v3585_v46  ;;  %2939 = vrsqrt.f32 %v2101_v37  ;;  %v2075_v54 = vmul.f32 0.03125, %v2027_v14  ;;  %v2021_v12 = vpop.xlane.xlu0 %2020 }
 0x35f   : > { %v2265_v41 = vadd.f32 %v2984_v6, %v2233_v34  ;;  %v2201_v42 = vmul.f32 %v3743_v20, %v2163_v29  ;;  %2941 = vrsqrt.f32 %v2106_v55  ;;  %v2072_v18 = vmul.f32 0.03125, %v2021_v12 }
 0x360   : > { %v2932_v7 = vpop.eup %2931  ;;  %v2270_v1 = vadd.f32 %v2985_v40, %v2238_v3  ;;  %v2198_v24 = vmul.f32 %v3743_v20, %v2160_v53  ;;  %v2107_v19 = vadd.f32 1e-05, %v2075_v54  ;;  %v2988_v53 = vld [vmem:[%s3224_s25 + $0x28] sm:$0xff] }
 0x361   : > { %v2934_v23 = vpop.eup %2933  ;;  %2297 = vst [vmem:[%s3759_s28 + $0x8] sm:$0xff] %v2265_v41  ;;  %v2239_v46 = vadd.f32 %v3749_v10, %v2201_v42  ;;  %v2161_v11 = vmul.f32 %v2932_v7, %v3590_v51  ;;  %v2104_v16 = vadd.f32 1e-05, %v2072_v18  ;;  %v2023_v32 = vpop.xlane.xlu1 %2022  ;;  %v2987_v51 = vld [vmem:[%s3224_s25 + $0x20] sm:$0xff] }
 0x362   : > { %2302 = vst [vmem:[%s3759_s28 + $0x30] sm:$0xff] %v2270_v1  ;;  %v2236_v44 = vadd.f32 %v3749_v10, %v2198_v24  ;;  %v2166_v27 = vmul.f32 %v2934_v23, %v3597_v2  ;;  %2943 = vrsqrt.f32 %v2107_v19  ;;  %v2073_v33 = vmul.f32 0.03125, %v2023_v32  ;;  %v2033_v28 = vpop.xlane.xlu0 %2032  ;;  %v2990_v32 = vld [vmem:[%s3224_s25 + $0x58] sm:$0xff] }
 0x363   : > { %v2271_v62 = vadd.f32 %v2986_v35, %v2239_v46  ;;  %v2199_v61 = vmul.f32 %v3743_v20, %v2161_v11  ;;  %2945 = vrsqrt.f32 %v2104_v16  ;;  %v2078_v0 = vmul.f32 0.03125, %v2033_v28 }
 0x364   : > { %v2936_v22 = vpop.eup %2935  ;;  %v2268_v45 = vadd.f32 %v2987_v51, %v2236_v44  ;;  %v2204_v25 = vmul.f32 %v3743_v20, %v2166_v27  ;;  %v2105_v26 = vadd.f32 1e-05, %v2073_v33 }
 0x365   : > { %v2938_v48 = vpop.eup %2937  ;;  %2303 = vst [vmem:[%s3759_s28 + $0x38] sm:$0xff] %v2271_v62  ;;  %v2237_v2 = vadd.f32 %v3749_v10, %v2199_v61  ;;  %v2167_v37 = vmul.f32 %v2936_v22, %v3602_v17  ;;  %v2110_v39 = vadd.f32 1e-05, %v2078_v0  ;;  %v2035_v34 = vpop.xlane.xlu1 %2034  ;;  %v2989_v17 = vld [vmem:[%s3224_s25 + $0x50] sm:$0xff] }
 0x366   : > { %2300 = vst [vmem:[%s3759_s28 + $0x20] sm:$0xff] %v2268_v45  ;;  %v2242_v29 = vadd.f32 %v3749_v10, %v2204_v25  ;;  %v2164_v55 = vmul.f32 %v2938_v48, %v3609_v58  ;;  %2947 = vrsqrt.f32 %v2105_v26  ;;  %v2079_v14 = vmul.f32 0.03125, %v2035_v34  ;;  %v2029_v3 = vpop.xlane.xlu0 %2028 }
 0x367   : > { %v2269_v54 = vadd.f32 %v2988_v53, %v2237_v2  ;;  %v2205_v12 = vmul.f32 %v3743_v20, %v2167_v37  ;;  %2949 = vrsqrt.f32 %v2110_v39  ;;  %v2076_v6 = vmul.f32 0.03125, %v2029_v3  ;;  %v2992_v37 = vld [vmem:[%s3224_s25 + $0x48] sm:$0xff] }
 0x368   : > { %v2940_v41 = vpop.eup %2939  ;;  %v2274_v42 = vadd.f32 %v2989_v17, %v2242_v29  ;;  %v2202_v18 = vmul.f32 %v3743_v20, %v2164_v55  ;;  %v2111_v7 = vadd.f32 1e-05, %v2079_v14 }
 0x369   : > { %v2942_v40 = vpop.eup %2941  ;;  %2301 = vst [vmem:[%s3759_s28 + $0x28] sm:$0xff] %v2269_v54  ;;  %v2243_v58 = vadd.f32 %v3749_v10, %v2205_v12  ;;  %v2165_v1 = vmul.f32 %v2940_v41, %v3614_v13  ;;  %v2108_v24 = vadd.f32 1e-05, %v2076_v6  ;;  %v2031_v19 = vpop.xlane.xlu1 %2030  ;;  %v2991_v13 = vld [vmem:[%s3224_s25 + $0x40] sm:$0xff] }
 0x36a   : > { %2306 = vst [vmem:[%s3759_s28 + $0x50] sm:$0xff] %v2274_v42  ;;  %v2240_v23 = vadd.f32 %v3749_v10, %v2202_v18  ;;  %v2170_v46 = vmul.f32 %v2942_v40, %v3621_v36  ;;  %2951 = vrsqrt.f32 %v2111_v7  ;;  %v2077_v11 = vmul.f32 0.03125, %v2031_v19  ;;  %v2041_v16 = vpop.xlane.xlu0 %2040  ;;  %v2994_v40 = vld [vmem:[%s3224_s25 + $0x78] sm:$0xff] }
 0x36b   : > { %v2275_v44 = vadd.f32 %v2990_v32, %v2243_v58  ;;  %v2203_v27 = vmul.f32 %v3743_v20, %v2165_v1  ;;  %2953 = vrsqrt.f32 %v2108_v24  ;;  %v2082_v33 = vmul.f32 0.03125, %v2041_v16 }
 0x36c   : > { %v2944_v28 = vpop.eup %2943  ;;  %v2272_v35 = vadd.f32 %v2991_v13, %v2240_v23  ;;  %v2208_v62 = vmul.f32 %v3743_v20, %v2170_v46  ;;  %v2109_v61 = vadd.f32 1e-05, %v2077_v11 }
 0x36d   : > { %v2946_v0 = vpop.eup %2945  ;;  %2307 = vst [vmem:[%s3759_s28 + $0x58] sm:$0xff] %v2275_v44  ;;  %v2241_v36 = vadd.f32 %v3749_v10, %v2203_v27  ;;  %v2171_v22 = vmul.f32 %v2944_v28, %v3626_v4  ;;  %v2114_v51 = vadd.f32 1e-05, %v2082_v33  ;;  %v2043_v45 = vpop.xlane.xlu1 %2042  ;;  %v2993_v4 = vld [vmem:[%s3224_s25 + $0x70] sm:$0xff] }
 0x36e   : > { %2304 = vst [vmem:[%s3759_s28 + $0x40] sm:$0xff] %v2272_v35  ;;  %v2246_v25 = vadd.f32 %v3749_v10, %v2208_v62  ;;  %v2168_v26 = vmul.f32 %v2946_v0, %v3633_v50  ;;  %2955 = vrsqrt.f32 %v2109_v61  ;;  %v2083_v48 = vmul.f32 0.03125, %v2043_v45  ;;  %v2037_v2 = vpop.xlane.xlu0 %2036  ;;  %v2996_v62 = vld [vmem:[%s3224_s25 + $0x68] sm:$0xff] }
 0x36f   : > { %v2273_v39 = vadd.f32 %v2992_v37, %v2241_v36  ;;  %v2209_v34 = vmul.f32 %v3743_v20, %v2171_v22  ;;  %2957 = vrsqrt.f32 %v2114_v51  ;;  %v2080_v29 = vmul.f32 0.03125, %v2037_v2 }
 0x370   : > { %v2948_v55 = vpop.eup %2947  ;;  %v2278_v14 = vadd.f32 %v2993_v4, %v2246_v25  ;;  %v2206_v3 = vmul.f32 %v3743_v20, %v2168_v26  ;;  %v2115_v53 = vadd.f32 1e-05, %v2083_v48  ;;  %v2998_v4 = vld [vmem:[%s3224_s25 + $0x98] sm:$0xff] }
 0x371   : > { %v2950_v54 = vpop.eup %2949  ;;  %2305 = vst [vmem:[%s3759_s28 + $0x48] sm:$0xff] %v2273_v39  ;;  %v2247_v50 = vadd.f32 %v3749_v10, %v2209_v34  ;;  %v2169_v12 = vmul.f32 %v2948_v55, %v3638_v52  ;;  %v2112_v6 = vadd.f32 1e-05, %v2080_v29  ;;  %v2039_v41 = vpop.xlane.xlu1 %2038  ;;  %v2995_v52 = vld [vmem:[%s3224_s25 + $0x60] sm:$0xff] }
 0x372   : > { %2310 = vst [vmem:[%s3759_s28 + $0x70] sm:$0xff] %v2278_v14  ;;  %v2244_v17 = vadd.f32 %v3749_v10, %v2206_v3  ;;  %v2174_v42 = vmul.f32 %v2950_v54, %v3645_v15  ;;  %2959 = vrsqrt.f32 %v2115_v53  ;;  %v2081_v18 = vmul.f32 0.03125, %v2039_v41  ;;  %v2049_v7 = vpop.xlane.xlu0 %2048 }
 0x373   : > { %v2279_v58 = vadd.f32 %v2994_v40, %v2247_v50  ;;  %v2207_v1 = vmul.f32 %v3743_v20, %v2169_v12  ;;  %2961 = vrsqrt.f32 %v2112_v6  ;;  %v2086_v24 = vmul.f32 0.03125, %v2049_v7 }
 0x374   : > { %v2952_v19 = vpop.eup %2951  ;;  %v2276_v23 = vadd.f32 %v2995_v52, %v2244_v17  ;;  %v2212_v46 = vmul.f32 %v3743_v20, %v2174_v42  ;;  %v2113_v11 = vadd.f32 1e-05, %v2081_v18 }
 0x375   : > { %v2954_v16 = vpop.eup %2953  ;;  %2311 = vst [vmem:[%s3759_s28 + $0x78] sm:$0xff] %v2279_v58  ;;  %v2245_v15 = vadd.f32 %v3749_v10, %v2207_v1  ;;  %v2175_v32 = vmul.f32 %v2952_v19, %v3650_v8  ;;  %v2118_v44 = vadd.f32 1e-05, %v2086_v24  ;;  %v2051_v27 = vpop.xlane.xlu1 %2050  ;;  %v2997_v8 = vld [vmem:[%s3224_s25 + $0x90] sm:$0xff]  ;;  %v3000_v24 = vld [vmem:[%s3224_s25 + $0x88] sm:$0xff] }
 0x376   : > { %2308 = vst [vmem:[%s3759_s28 + $0x60] sm:$0xff] %v2276_v23  ;;  %v2250_v33 = vadd.f32 %v3749_v10, %v2212_v46  ;;  %v2172_v28 = vmul.f32 %v2954_v16, %v3657_v59  ;;  %2963 = vrsqrt.f32 %v2113_v11  ;;  %v2087_v13 = vmul.f32 0.03125, %v2051_v27  ;;  %v2045_v35 = vpop.xlane.xlu0 %2044 }
 0x377   : > { %v2277_v61 = vadd.f32 %v2996_v62, %v2245_v15  ;;  %v2213_v0 = vmul.f32 %v3743_v20, %v2175_v32  ;;  %2965 = vrsqrt.f32 %v2118_v44  ;;  %v2084_v36 = vmul.f32 0.03125, %v2045_v35  ;;  %v3002_v62 = vld [vmem:[%s3224_s25 + $0xb8] sm:$0xff] }
 0x378   : > { %v2956_v22 = vpop.eup %2955  ;;  %v2282_v51 = vadd.f32 %v2997_v8, %v2250_v33  ;;  %v2210_v45 = vmul.f32 %v3743_v20, %v2172_v28  ;;  %v2119_v25 = vadd.f32 1e-05, %v2087_v13 }
 0x379   : > { %v2958_v26 = vpop.eup %2957  ;;  %2309 = vst [vmem:[%s3759_s28 + $0x68] sm:$0xff] %v2277_v61  ;;  %v2251_v59 = vadd.f32 %v3749_v10, %v2213_v0  ;;  %v2173_v48 = vmul.f32 %v2956_v22, %v3662_v30  ;;  %v2116_v2 = vadd.f32 1e-05, %v2084_v36  ;;  %v2047_v37 = vpop.xlane.xlu1 %2046  ;;  %v2999_v30 = vld [vmem:[%s3224_s25 + $0x80] sm:$0xff] }
 0x37a   : > { %2314 = vst [vmem:[%s3759_s28 + $0x90] sm:$0xff] %v2282_v51  ;;  %v2248_v39 = vadd.f32 %v3749_v10, %v2210_v45  ;;  %v2178_v34 = vmul.f32 %v2958_v26, %v3669_v56  ;;  %2967 = vrsqrt.f32 %v2119_v25  ;;  %v2085_v29 = vmul.f32 0.03125, %v2047_v37  ;;  %v2053_v55 = vpop.xlane.xlu0 %2052  ;;  %v3003_v22 = vld [vmem:[%s3224_s25 + $0xa0] sm:$0xff] }
 0x37b   : > { %v2283_v14 = vadd.f32 %v2998_v4, %v2251_v59  ;;  %v2211_v3 = vmul.f32 %v3743_v20, %v2173_v48  ;;  %2969 = vrsqrt.f32 %v2116_v2  ;;  %v2088_v53 = vmul.f32 0.03125, %v2053_v55  ;;  %v3004_v48 = vld [vmem:[%s3224_s25 + $0xa8] sm:$0xff] }
 0x37c   : > { %v2960_v54 = vpop.eup %2959  ;;  %v2280_v50 = vadd.f32 %v2999_v30, %v2248_v39  ;;  %v2216_v12 = vmul.f32 %v3743_v20, %v2178_v34  ;;  %v2117_v6 = vadd.f32 1e-05, %v2085_v29  ;;  %v3005_v34 = vld [vmem:[%s3224_s25 + $0xd0] sm:$0xff] }
 0x37d   : > { %v2962_v41 = vpop.eup %2961  ;;  %2315 = vst [vmem:[%s3759_s28 + $0x98] sm:$0xff] %v2283_v14  ;;  %v2249_v56 = vadd.f32 %v3749_v10, %v2211_v3  ;;  %v2179_v17 = vmul.f32 %v2960_v54, %v3674_v43  ;;  %v2120_v42 = vadd.f32 1e-05, %v2088_v53  ;;  %v2055_v18 = vpop.xlane.xlu1 %2054  ;;  %v3001_v43 = vld [vmem:[%s3224_s25 + $0xb0] sm:$0xff]  ;;  %v3006_v53 = vld [vmem:[%s3224_s25 + $0xd8] sm:$0xff] }
 0x37e   : > { %2312 = vst [vmem:[%s3759_s28 + $0x80] sm:$0xff] %v2280_v50  ;;  %v2254_v7 = vadd.f32 %v3749_v10, %v2216_v12  ;;  %v2176_v40 = vmul.f32 %v2962_v41, %v3681_v21  ;;  %2971 = vrsqrt.f32 %v2117_v6  ;;  %v2089_v58 = vmul.f32 0.03125, %v2055_v18  ;;  %v2057_v1 = vpop.xlane.xlu0 %2056  ;;  %v3007_v12 = vld [vmem:[%s3224_s25 + $0xc0] sm:$0xff]  ;;  %v3008_v18 = vld [vmem:[%s3224_s25 + $0xc8] sm:$0xff] }
 0x37f   : > { %v2281_v19 = vadd.f32 %v3000_v24, %v2249_v56  ;;  %v2217_v52 = vmul.f32 %v3743_v20, %v2179_v17  ;;  %2973 = vrsqrt.f32 %v2120_v42  ;;  %v2090_v23 = vmul.f32 0.03125, %v2057_v1  ;;  %v3009_v1 = vld [vmem:[%s3224_s25 + $0xe0] sm:$0xff] }
 0x380   : > { %v2964_v46 = vpop.eup %2963  ;;  %v2286_v11 = vadd.f32 %v3001_v43, %v2254_v7  ;;  %v2214_v16 = vmul.f32 %v3743_v20, %v2176_v40  ;;  %v2121_v15 = vadd.f32 1e-05, %v2089_v58 }
 0x381   : > { %v2966_v32 = vpop.eup %2965  ;;  %2313 = vst [vmem:[%s3759_s28 + $0x88] sm:$0xff] %v2281_v19  ;;  %v2255_v21 = vadd.f32 %v3749_v10, %v2217_v52  ;;  %v2177_v44 = vmul.f32 %v2964_v46, %v3686_v47  ;;  %v2122_v27 = vadd.f32 1e-05, %v2090_v23  ;;  %v2059_v33 = vpop.xlane.xlu1 %2058  ;;  %v3010_v23 = vld [vmem:[%s3224_s25 + $0xe8] sm:$0xff] }
 0x382   : > { %2318 = vst [vmem:[%s3759_s28 + $0xb0] sm:$0xff] %v2286_v11  ;;  %v2252_v28 = vadd.f32 %v3749_v10, %v2214_v16  ;;  %v2182_v13 = vmul.f32 %v2966_v32, %v3693_v9  ;;  %2975 = vrsqrt.f32 %v2121_v15  ;;  %v2091_v35 = vmul.f32 0.03125, %v2059_v33  ;;  %v3011_v11 = vld [vmem:[%s3224_s25 + $0xf0] sm:$0xff]  ;;  %v3012_v32 = vld [vmem:[%s3224_s25 + $0xf8] sm:$0xff] }
 0x383   : > { %v2287_v61 = vadd.f32 %v3002_v62, %v2255_v21  ;;  %v2215_v0 = vmul.f32 %v3743_v20, %v2177_v44  ;;  %2977 = vrsqrt.f32 %v2122_v27 }
 0x384   : > { %v2968_v36 = vpop.eup %2967  ;;  %v2284_v47 = vadd.f32 %v3003_v22, %v2252_v28  ;;  %v2220_v8 = vmul.f32 %v3743_v20, %v2182_v13  ;;  %v2123_v51 = vadd.f32 1e-05, %v2091_v35 }
 0x385   : > { %v2970_v45 = vpop.eup %2969  ;;  %2319 = vst [vmem:[%s3759_s28 + $0xb8] sm:$0xff] %v2287_v61  ;;  %v2253_v9 = vadd.f32 %v3749_v10, %v2215_v0  ;;  %v2183_v25 = vmul.f32 %v2968_v36, %v3698_v57 }
 0x386   : > { %2316 = vst [vmem:[%s3759_s28 + $0xa0] sm:$0xff] %v2284_v47  ;;  %v2258_v26 = vadd.f32 %v3749_v10, %v2220_v8  ;;  %v2180_v59 = vmul.f32 %v2970_v45, %v3705_v31  ;;  %2979 = vrsqrt.f32 %v2123_v51 }
 0x387   : > { %v2285_v2 = vadd.f32 %v3004_v48, %v2253_v9  ;;  %v2221_v37 = vmul.f32 %v3743_v20, %v2183_v25 }
 0x388   : > { %v2972_v39 = vpop.eup %2971  ;;  %v2290_v29 = vadd.f32 %v3005_v34, %v2258_v26  ;;  %v2218_v55 = vmul.f32 %v3743_v20, %v2180_v59 }
 0x389   : > { %v2974_v57 = vpop.eup %2973  ;;  %2317 = vst [vmem:[%s3759_s28 + $0xa8] sm:$0xff] %v2285_v2  ;;  %v2259_v4 = vadd.f32 %v3749_v10, %v2221_v37  ;;  %v2181_v31 = vmul.f32 %v2972_v39, %v3710_v49 }
 0x38a   : > { %2322 = vst [vmem:[%s3759_s28 + $0xd0] sm:$0xff] %v2290_v29  ;;  %v2256_v14 = vadd.f32 %v3749_v10, %v2218_v55  ;;  %v2184_v3 = vmul.f32 %v2974_v57, %v3717_v60 }
 0x38b   : > { %v2291_v54 = vadd.f32 %v3006_v53, %v2259_v4  ;;  %v2219_v30 = vmul.f32 %v3743_v20, %v2181_v31 }
 0x38c   : > { %v2976_v50 = vpop.eup %2975  ;;  %v2288_v6 = vadd.f32 %v3007_v12, %v2256_v14  ;;  %v2222_v41 = vmul.f32 %v3743_v20, %v2184_v3 }
 0x38d   : > { %v2978_v56 = vpop.eup %2977  ;;  %2323 = vst [vmem:[%s3759_s28 + $0xd8] sm:$0xff] %v2291_v54  ;;  %v2257_v49 = vadd.f32 %v3749_v10, %v2219_v30  ;;  %v2185_v17 = vmul.f32 %v2976_v50, %v3725_v63 }
 0x38e   : > { %2320 = vst [vmem:[%s3759_s28 + $0xc0] sm:$0xff] %v2288_v6  ;;  %v2260_v60 = vadd.f32 %v3749_v10, %v2222_v41  ;;  %v2186_v42 = vmul.f32 %v2978_v56, %v3731_v5 }
 0x38f   : > { %v2289_v7 = vadd.f32 %v3008_v18, %v2257_v49  ;;  %v2223_v40 = vmul.f32 %v3743_v20, %v2185_v17 }
 0x390   : > { %v2980_v58 = vpop.eup %2979  ;;  %v2292_v24 = vadd.f32 %v3009_v1, %v2260_v60  ;;  %v2224_v19 = vmul.f32 %v3743_v20, %v2186_v42 }
 0x391   : > { %2321 = vst [vmem:[%s3759_s28 + $0xc8] sm:$0xff] %v2289_v7  ;;  %v2261_v63 = vadd.f32 %v3749_v10, %v2223_v40  ;;  %v2187_v52 = vmul.f32 %v2980_v58, %v3736_v38 }
 0x392   : > { %2324 = vst [vmem:[%s3759_s28 + $0xe0] sm:$0xff] %v2292_v24  ;;  %v2262_v5 = vadd.f32 %v3749_v10, %v2224_v19 }
 0x393   : > { %v2293_v46 = vadd.f32 %v3010_v23, %v2261_v63  ;;  %v2225_v43 = vmul.f32 %v3743_v20, %v2187_v52 }
 0x394   : > { %v2294_v16 = vadd.f32 %v3011_v11, %v2262_v5 }
 0x395   : > { %2325 = vst [vmem:[%s3759_s28 + $0xe8] sm:$0xff] %v2293_v46  ;;  %v2263_v15 = vadd.f32 %v3749_v10, %v2225_v43 }
 0x396   : > { %2326 = vst [vmem:[%s3759_s28 + $0xf0] sm:$0xff] %v2294_v16 }
 0x397   : > { %v2295_v21 = vadd.f32 %v3012_v32, %v2263_v15 }
 0x399   : > { %2327 = vst [vmem:[%s3759_s28 + $0xf8] sm:$0xff] %v2295_v21 }
 0x39a PF: > { %s21_s17 = sadd.s32 1, %s3019_s17  }
 0x39b   : > { %p18_p4 = scmp.ge.s32.totalorder %s21_s17, 5  }
 0x39d   :  { %20 = sbr.rel (!%p18_p4) target bundleno = 1 (0x1), region = 100 }

</bundles_post_ra>
